<compile_context>
chip_gen: v7x
topology: tpu7x:2x2x1
jax: 0.10.0
libtpu: 0.0.40
codegen_flags: <defaults>
</compile_context>

<pallas_src>
import functools

import jax
import jax.numpy as jnp
from jax.experimental import pallas as pl
from jax.experimental.pallas import tpu as pltpu


def _round_up(x, m):
    return ((x + m - 1) // m) * m


def actor_kernel(x_ref, w1_ref, b1_ref, w2_ref, b2_ref, out_ref, *, action_bound):
    """One batch tile of: tanh(relu(x @ W1 + b1) @ W2 + b2) * action_bound."""
    x = x_ref[...]                                           # (TB, S) f32
    # MXU matmuls with bf16 operands, f32 accumulation; bias add in f32.
    h = jnp.dot(x.astype(w1_ref.dtype), w1_ref[...],
                preferred_element_type=jnp.float32) + b1_ref[...]
    h = jnp.maximum(h, 0.0)                                  # ReLU (VPU, f32)
    a = jnp.dot(h.astype(w2_ref.dtype), w2_ref[...],
                preferred_element_type=jnp.float32) + b2_ref[...]
    # action_bound is a compile-time Python float (no SMEM operand).
    out_ref[...] = jnp.tanh(a) * action_bound                # tanh on EUP, scale on VPU


def actor_forward(states, w1, b1, w2, b2, action_bound, action_dim, *, batch_tile=256):
    """states: (B, state_dim) f32 -> (B, action_dim) f32 (same as ActorNet.forward)."""
    B, S = states.shape
    H = w1.shape[1]        # padded hidden width (lane/MXU aligned)
    A_pad = w2.shape[1]    # padded action width (multiple of 128 -> lane-dense output)

    # Batch tiling: pad B up to an exact grid, slice the padding off at the end.
    TB = min(batch_tile, _round_up(B, 8))
    Bp = _round_up(B, TB)
    if Bp != B:
        states = jnp.pad(states, ((0, Bp - B), (0, 0)))

    kernel = functools.partial(actor_kernel, action_bound=float(action_bound))

    out = pl.pallas_call(
        kernel,
        out_shape=jax.ShapeDtypeStruct((Bp, A_pad), jnp.float32),
        grid=(Bp // TB,),
        in_specs=[
            # Only the states tile advances with the grid; weights/biases map to
            # block (0, 0) every step so they stay resident in VMEM.
            pl.BlockSpec((TB, S), lambda i: (i, 0)),        # states tile
            pl.BlockSpec((S, H), lambda i: (0, 0)),         # w1 (resident)
            pl.BlockSpec((1, H), lambda i: (0, 0)),         # b1 (resident)
            pl.BlockSpec((H, A_pad), lambda i: (0, 0)),     # w2 (resident)
            pl.BlockSpec((1, A_pad), lambda i: (0, 0)),     # b2 (resident)
        ],
        # Lane-dense (multiple-of-128) output slab -> unmasked stores.
        out_specs=pl.BlockSpec((TB, A_pad), lambda i: (i, 0)),
        compiler_params=pltpu.CompilerParams(
            # Batch axis is embarrassingly parallel: shards across v7x's two
            # TensorCores; harmless on single-TC v5e/v6e.
            dimension_semantics=("parallel",),
        ),
    )(states, w1, b1, w2, b2)

    return out[:B, :action_dim]


def init_actor_params(key, state_dim, action_dim, num_hiddens=300):
    """Matches the torch init: weights ~ N(0, 0.001), biases = 0.
    Weights stored as (in, out), i.e. transpose of torch's (out, in)."""
    k1, k2 = jax.random.split(key)
    w1 = 0.001 * jax.random.normal(k1, (state_dim, num_hiddens), dtype=jnp.float32)
    b1 = jnp.zeros((num_hiddens,), dtype=jnp.float32)
    w2 = 0.001 * jax.random.normal(k2, (num_hiddens, action_dim), dtype=jnp.float32)
    b2 = jnp.zeros((action_dim,), dtype=jnp.float32)
    return w1, b1, w2, b2


def prepare_actor_params(w1, b1, w2, b2, *, weight_dtype=jnp.bfloat16):
    """Zero-pad to MXU/lane-aligned shapes and cast weights to the MXU dtype.

    Hidden width -> next multiple of 256 (300 -> 512), action width -> next
    multiple of 128.  Padding is zeros, so results on the real columns are
    unchanged.  Biases stay f32 (added after the f32 accumulator).
    """
    S, H = w1.shape
    A = w2.shape[1]
    Hp = _round_up(H, 256)
    Ap = _round_up(A, 128)
    w1p = jnp.zeros((S, Hp), jnp.float32).at[:, :H].set(w1).astype(weight_dtype)
    b1p = jnp.zeros((1, Hp), jnp.float32).at[:, :H].set(b1)
    w2p = jnp.zeros((Hp, Ap), jnp.float32).at[:H, :A].set(w2).astype(weight_dtype)
    b2p = jnp.zeros((1, Ap), jnp.float32).at[:, :A].set(b2)
    return w1p, b1p, w2p, b2p


if __name__ == "__main__":
    key = jax.random.PRNGKey(0)

    state_dim = 4
    action_dim = 2
    action_bound = (-2.0, 2.0)     # ActorNet uses action_bound[1]
    batch = 1000                   # amortize the pallas_call over many rows

    k_params, k_states = jax.random.split(key)
    w1, b1, w2, b2 = init_actor_params(k_params, state_dim, action_dim)
    w1p, b1p, w2p, b2p = prepare_actor_params(w1, b1, w2, b2)

    states = jax.random.normal(k_states, (batch, state_dim), dtype=jnp.float32)

    out = actor_forward(states, w1p, b1p, w2p, b2p, action_bound[1], action_dim)
    out = jax.block_until_ready(out)
    assert out.shape == (batch, action_dim)

    # Reference 1: same padded bf16 weights, plain JAX (tight tolerance).
    h_ref = jnp.dot(states.astype(w1p.dtype), w1p,
                    preferred_element_type=jnp.float32) + b1p
    h_ref = jnp.maximum(h_ref, 0.0)
    a_ref = jnp.dot(h_ref.astype(w2p.dtype), w2p,
                    preferred_element_type=jnp.float32) + b2p
    ref_bf16 = (jnp.tanh(a_ref) * action_bound[1])[:, :action_dim]
    assert jnp.allclose(out, ref_bf16, atol=2e-6, rtol=2e-2), "mismatch vs bf16 reference"

    # Reference 2: original unpadded f32 network (looser tolerance: bf16 weights).
    ref_f32 = jnp.tanh(jnp.maximum(states @ w1 + b1, 0.0) @ w2 + b2) * action_bound[1]
    assert jnp.allclose(out, ref_f32, atol=5e-6, rtol=5e-2), "mismatch vs f32 reference"

    print("KERNEL_OK")
</pallas_src>

<mosaic_0001>
module attributes {stable_mosaic.version = 11 : i64} {
  func.func @actor_kernel(%arg0: i32, %arg1: memref<256x4xf32, #tpu.memory_space<vmem>>, %arg2: memref<4x512xbf16, #tpu.memory_space<vmem>>, %arg3: memref<1x512xf32, #tpu.memory_space<vmem>>, %arg4: memref<512x128xbf16, #tpu.memory_space<vmem>>, %arg5: memref<1x128xf32, #tpu.memory_space<vmem>>, %arg6: memref<256x128xf32, #tpu.memory_space<vmem>>) attributes {dimension_semantics = [#tpu.dimension_semantics<parallel>], iteration_bounds = array<i64: 4>, scalar_prefetch = 0 : i64, scratch_operands = 0 : i64, tpu.core_type = #tpu.core_type<tc>, window_params = [{transform_indices = @transform_0, window_bounds = array<i64: 256, 4>}, {pipeline_mode = #tpu.pipeline_mode<synchronous>, transform_indices = @transform_1, window_bounds = array<i64: 4, 512>}, {pipeline_mode = #tpu.pipeline_mode<synchronous>, transform_indices = @transform_2, window_bounds = array<i64: 1, 512>}, {pipeline_mode = #tpu.pipeline_mode<synchronous>, transform_indices = @transform_3, window_bounds = array<i64: 512, 128>}, {pipeline_mode = #tpu.pipeline_mode<synchronous>, transform_indices = @transform_4, window_bounds = array<i64: 1, 128>}, {transform_indices = @transform_5, window_bounds = array<i64: 256, 128>}]} {
    %c0 = arith.constant 0 : index
    %c0_0 = arith.constant 0 : index
    %0 = vector.load %arg1[%c0, %c0_0] : memref<256x4xf32, #tpu.memory_space<vmem>>, vector<256x4xf32>
    %1 = arith.truncf %0 : vector<256x4xf32> to vector<256x4xbf16>
    %c0_1 = arith.constant 0 : index
    %c0_2 = arith.constant 0 : index
    %2 = vector.load %arg2[%c0_1, %c0_2] : memref<4x512xbf16, #tpu.memory_space<vmem>>, vector<4x512xbf16>
    %cst = arith.constant dense<0.000000e+00> : vector<256x512xf32>
    %3 = tpu.matmul %1, %2, %cst {dimension_numbers = #tpu.dot_dimension_numbers<[1], [0], [0], [1], [0, 0, 1, 1], [], []>} : vector<256x4xbf16>, vector<4x512xbf16>, vector<256x512xf32> -> vector<256x512xf32>
    %c0_3 = arith.constant 0 : index
    %c0_4 = arith.constant 0 : index
    %4 = vector.load %arg3[%c0_3, %c0_4] : memref<1x512xf32, #tpu.memory_space<vmem>>, vector<1x512xf32>
    %5 = vector.broadcast %4 : vector<1x512xf32> to vector<256x512xf32>
    %6 = arith.addf %3, %5 : vector<256x512xf32>
    %cst_5 = arith.constant 0.000000e+00 : f32
    %7 = vector.broadcast %cst_5 : f32 to vector<256x512xf32>
    %8 = arith.maximumf %6, %7 : vector<256x512xf32>
    %9 = arith.truncf %8 : vector<256x512xf32> to vector<256x512xbf16>
    %c0_6 = arith.constant 0 : index
    %c0_7 = arith.constant 0 : index
    %10 = vector.load %arg4[%c0_6, %c0_7] : memref<512x128xbf16, #tpu.memory_space<vmem>>, vector<512x128xbf16>
    %cst_8 = arith.constant dense<0.000000e+00> : vector<256x128xf32>
    %11 = tpu.matmul %9, %10, %cst_8 {dimension_numbers = #tpu.dot_dimension_numbers<[1], [0], [0], [1], [0, 0, 1, 1], [], []>} : vector<256x512xbf16>, vector<512x128xbf16>, vector<256x128xf32> -> vector<256x128xf32>
    %c0_9 = arith.constant 0 : index
    %c0_10 = arith.constant 0 : index
    %12 = vector.load %arg5[%c0_9, %c0_10] : memref<1x128xf32, #tpu.memory_space<vmem>>, vector<1x128xf32>
    %13 = vector.broadcast %12 : vector<1x128xf32> to vector<256x128xf32>
    %14 = arith.addf %11, %13 : vector<256x128xf32>
    %15 = math.tanh %14 : vector<256x128xf32>
    %cst_11 = arith.constant 2.000000e+00 : f32
    %16 = vector.broadcast %cst_11 : f32 to vector<256x128xf32>
    %17 = arith.mulf %15, %16 : vector<256x128xf32>
    %c0_12 = arith.constant 0 : index
    %c0_13 = arith.constant 0 : index
    %18 = vector.load %arg6[%c0_12, %c0_13] : memref<256x128xf32, #tpu.memory_space<vmem>>, vector<256x128xf32>
    tpu.vector_store %arg6[%c0_12, %c0_13], %17 {strides = array<i32>} : memref<256x128xf32, #tpu.memory_space<vmem>>, vector<256x128xf32>,
    return
  }
  func.func @transform_0(%arg0: i32) -> (i32, i32) {
    %c0_i32 = arith.constant 0 : i32
    %c0_i32_0 = arith.constant 0 : i32
    return %arg0, %c0_i32 : i32, i32
  }
  func.func @transform_1(%arg0: i32) -> (i32, i32) {
    %c0_i32 = arith.constant 0 : i32
    %c0_i32_0 = arith.constant 0 : i32
    %c0_i32_1 = arith.constant 0 : i32
    return %c0_i32, %c0_i32_0 : i32, i32
  }
  func.func @transform_2(%arg0: i32) -> (i32, i32) {
    %c0_i32 = arith.constant 0 : i32
    %c0_i32_0 = arith.constant 0 : i32
    %c0_i32_1 = arith.constant 0 : i32
    return %c0_i32, %c0_i32_0 : i32, i32
  }
  func.func @transform_3(%arg0: i32) -> (i32, i32) {
    %c0_i32 = arith.constant 0 : i32
    %c0_i32_0 = arith.constant 0 : i32
    %c0_i32_1 = arith.constant 0 : i32
    return %c0_i32, %c0_i32_0 : i32, i32
  }
  func.func @transform_4(%arg0: i32) -> (i32, i32) {
    %c0_i32 = arith.constant 0 : i32
    %c0_i32_0 = arith.constant 0 : i32
    %c0_i32_1 = arith.constant 0 : i32
    return %c0_i32, %c0_i32_0 : i32, i32
  }
  func.func @transform_5(%arg0: i32) -> (i32, i32) {
    %c0_i32 = arith.constant 0 : i32
    %c0_i32_0 = arith.constant 0 : i32
    return %arg0, %c0_i32 : i32, i32
  }
}

</mosaic_0001>

<bundles_post_ra>
// kernel: tpu_custom_call.1
= control target key start
LH: loop header
LB: loop body
LE: loop exit
PB: predicated region body
PF: predicated region fallthrough
CT: control target
= control target key end

     0   :  { %10 = vsyncpa [#allocation3], 0  ;;  %s2777_s0 = inlined_call_operand.vmem [shape: f32[1024,4], index: 0, kind: input, shape index: {}]   ;;  %s2778_s1 = inlined_call_operand.vmem [shape: bf16[4,512], index: 1, kind: input, shape index: {}]   ;;  %s2779_s2 = inlined_call_operand.vmem [shape: f32[1,512], index: 2, kind: input, shape index: {}]   ;;  %s2780_s3 = inlined_call_operand.vmem [shape: bf16[512,128], index: 3, kind: input, shape index: {}]   ;;  %s2781_s4 = inlined_call_operand.vmem [shape: f32[1,128], index: 4, kind: input, shape index: {}]   ;;  %s2782_s5 = inlined_call_operand.hbm [shape: f32[1024,128], index: 5, kind: output, shape index: {}]  }
   0x1   :  { %12 = vsyncpa [#allocation3 + $0x1], 0  ;;  %s2256_s18 = smov 0   ;;  %s2258_s19 = smov 0  }
   0x2   :  { %s2260_s20 = smov 0   ;;  %s2262_s21 = smov 0  }
   0x3 LB: > { %s2277_s22 = sadd.s32 4294967295, %s2219_s21   ;;  %s1713_s23 = sadd.s32 4294967294, %s2219_s21   ;;  %s2219_s21 = sphi %s2262_s21, %s2788_s21   ;;  %s2215_s20 = sphi %s2260_s20, %s2787_s20   ;;  %s2211_s19 = sphi %s2258_s19, %s2786_s19   ;;  %s2207_s18 = sphi %s2256_s18, %s2785_s18  }
   0x4   : > { %s2281_s24 = sadd.s32 1, %s2219_s21   ;;  %s135_s25 = sadd.s32 1, %s2215_s20 }
   0x5   : > { %s132_s26 = ssub.s32 %s2219_s21, %s2281_s24  ;;  %p145_p0 = scmp.ne.s32.totalorder %s2215_s20, %s2211_s19 }
   0x6   : > { %p133_p1 = scmp.eq.s32.totalorder %s132_s26, 0  ;;  %p146_p2 = scmp.eq.s32.totalorder %s2277_s22, 3 }
   0x7   : > { %p151_p3 = scmp.ne.s32.totalorder %s2211_s19, %s2207_s18  ;;  %p152_p4 = scmp.eq.s32.totalorder %s1713_s23, 3 }
   0x8   : > { %s2292_s27 = scalar_select %p133_p1, %s2215_s20, %s135_s25  }
   0x9   : > { %p2294_p5 = por %p146_p2, %p145_p0  ;;  %p2298_p6 = por %p152_p4, %p151_p3 }
   0xa   : > { %p1716_p7 = scmp.ge.s32.totalorder %s2219_s21, 1  ;;  %p191_p8 = scmp.lt.s32.totalorder %s2219_s21, 5 }
   0xc   : > { %p192_p9 = pnand %p1716_p7, %p191_p8 }
   0xd   : > { %v275_v0 = vld [vmem:[%s2778_s1] sm:$0xff] (!%p192_p9)  ;;  %v278_v1 = vlaneseq (!%p192_p9)  ;;  %v2221_v2 = vmov (!%p192_p9), 1983009808   ;;  %s1718_s7 = sshll.u32 (!%p192_p9), %s2277_s22, 5  ;;  %v2222_v5 = vmov (!%p192_p9), 0   ;;  %vm365_vm0 = vcmask (!%p192_p9), 1041408  }
   0xe   : > { %195 = sbr.rel (%p192_p9) target bundleno = 619 (0x26b), region = 40  ;;  %v301_v3 = vunpack.c.l.s4 (!%p192_p9), %v2221_v2  ;;  %410 = vmatprep.mubr.bf16.mxu0 (!%p192_p9), %v2222_v5  ;;  %603 = vmatprep.mubr.bf16.mxu1 (!%p192_p9), %v2222_v5  ;;  %p220_p10 = scmp.lt.s32.totalorder (!%p192_p9), %s1718_s7, 127  ;;  %v299_v7 = vcombine.high (!%p192_p9), %v275_v0, %v275_v0  ;;  %v2061_v17 = vld [vmem:[%s2780_s3 + $0x40] sm:$0xff] (!%p192_p9)   ;;  %vm316_vm1 = vcmask (!%p192_p9), 31744   ;;  %v2065_v22 = vld [vmem:[%s2780_s3 + $0x48] sm:$0xff] (!%p192_p9)   ;;  %v2069_v29 = vld [vmem:[%s2780_s3 + $0x50] sm:$0xff] (!%p192_p9)  }
   0xf   : > { %v2308_v4 = vshrl.u32 (!%p192_p9), %v278_v1, 7  ;;  %v2063_v18 = vld [vmem:[%s2780_s3 + $0xc0] sm:$0xff] (!%p192_p9)   ;;  %v2066_v25 = vld [vmem:[%s2780_s3 + $0x8] sm:$0xff] (!%p192_p9)   ;;  %v2070_v32 = vld [vmem:[%s2780_s3 + $0x10] sm:$0xff] (!%p192_p9)   ;;  %s216_s25 = sand.u32 (!%p192_p9), 1, %s2211_s19   ;;  %s1792_s6 = sshll.u32 (!%p192_p9), %s2277_s22, 12 }
  0x10   : > { %v302_v6 = vunpack.c.0.s8 (!%p192_p9), %v301_v3  ;;  %v2062_v20 = vld [vmem:[%s2780_s3] sm:$0xff] (!%p192_p9)   ;;  %v2067_v26 = vld [vmem:[%s2780_s3 + $0xc8] sm:$0xff] (!%p192_p9)   ;;  %v2071_v33 = vld [vmem:[%s2780_s3 + $0xd0] sm:$0xff] (!%p192_p9)   ;;  %s1717_s26 = sshll.u32 (!%p192_p9), %s216_s25, 8  ;;  %s2728_s10 = scalar_lea.hbm (!%p192_p9), %s2782_s5, %s1792_s6 }
  0x11   : > { %v2064_v21 = vld [vmem:[%s2780_s3 + $0x80] sm:$0xff] (!%p192_p9)   ;;  %v2068_v28 = vld [vmem:[%s2780_s3 + $0x88] sm:$0xff] (!%p192_p9)   ;;  %v2072_v34 = vld [vmem:[%s2780_s3 + $0x90] sm:$0xff] (!%p192_p9)   ;;  %s2664_s30 = scalar_lea.vmem (!%p192_p9), [#allocation2], %s1717_s26  ;;  %s2736_s12 = scalar_lea.sflag (!%p192_p9), [#allocation3], %s216_s25 }
  0x12   : > { %v305_v8 = vsub.s32 (!%p192_p9), %v302_v6, %v2308_v4  ;;  %v2073_v35 = vld [vmem:[%s2780_s3 + $0x58] sm:$0xff] (!%p192_p9)   ;;  %v2077_v40 = vld [vmem:[%s2780_s3 + $0x60] sm:$0xff] (!%p192_p9)   ;;  %v2081_v46 = vld [vmem:[%s2780_s3 + $0x68] sm:$0xff] (!%p192_p9)   ;;  %s2223_s13 = smov (!%p192_p9), [#allocation2]  }
  0x13   : > { %v2074_v36 = vld [vmem:[%s2780_s3 + $0x18] sm:$0xff] (!%p192_p9)   ;;  %v2078_v43 = vld [vmem:[%s2780_s3 + $0x20] sm:$0xff] (!%p192_p9)   ;;  %v2082_v47 = vld [vmem:[%s2780_s3 + $0x28] sm:$0xff] (!%p192_p9)   ;;  %s2161_s14 = sshll.u32 (!%p192_p9), %s2223_s13, 4  ;;  %s2162_s14 = int_to_ptr.vmem [resolvable:$false] %s2161_s14 }
  0x14   : > { %v306_v9 = vrot.slane (!%p192_p9), %v275_v0, %v305_v8  ;;  %v313_v10 = vrot.slane (!%p192_p9), %v299_v7, %v305_v8  ;;  %v2075_v38 = vld [vmem:[%s2780_s3 + $0xd8] sm:$0xff] (!%p192_p9)   ;;  %v2079_v44 = vld [vmem:[%s2780_s3 + $0xe0] sm:$0xff] (!%p192_p9)   ;;  %v2083_v49 = vld [vmem:[%s2780_s3 + $0xe8] sm:$0xff] (!%p192_p9)   ;;  %s2163_s15 = scalar_lea.vmem (!%p192_p9), %s2162_s14, 8192 }
  0x15   : > { %s2790_s7 = smov (!%p220_p10, %s1718_s7), 127  ;;  %v2076_v39 = vld [vmem:[%s2780_s3 + $0x98] sm:$0xff]   ;;  %v2080_v45 = vld [vmem:[%s2780_s3 + $0xa0] sm:$0xff]   ;;  %v2084_v50 = vld [vmem:[%s2780_s3 + $0xa8] sm:$0xff]  }
  0x16   : > { %s1719_s8 = sshll.u32 %s2790_s7, 3  ;;  %v314_v13 = vcombine.high %v306_v9, %v306_v9  ;;  %v315_v14 = vcombine.high %v313_v10, %v313_v10  ;;  %v367_v15 = vsel %vm365_vm0, %v306_v9, 0  ;;  %v373_v16 = vsel %vm365_vm0, %v313_v10, 0  ;;  %v2085_v51 = vld [vmem:[%s2780_s3 + $0x70] sm:$0xff]   ;;  %v2089_v57 = vld [vmem:[%s2780_s3 + $0x78] sm:$0xff]   ;;  %s1651_s7 = sshll.u32 %s2664_s30, 4  ;;  %s2730_s7 = int_to_ptr.vmem [resolvable:$true] %s1651_s7 }
  0x17   : > { %s2316_s11 = scalar_lea.vmem %s2777_s0, %s1719_s8  ;;  %v2086_v54 = vld [vmem:[%s2780_s3 + $0x30] sm:$0xff]   ;;  %v2090_v58 = vld [vmem:[%s2780_s3 + $0x38] sm:$0xff]   ;;  %s2157_s22 = scalar_lea.vmem %s2730_s7, 4096 }
  0x18   : > { %v227_v11 = vld [vmem:[%s2316_s11] sm:$0xff]  ;;  %v228_v12 = vld [vmem:[%s2316_s11 + $0x8] sm:$0xff]  ;;  %1720 = vmatprep.subr.msk.bf16.mxu0 %vm365_vm0, %v314_v13  ;;  %1737 = vmatprep.subr.msk.bf16.mxu1 %vm365_vm0, %v315_v14  ;;  %v229_v23 = vld [vmem:[%s2316_s11 + $0x10] sm:$0xff]  ;;  %p2158_p11 = scmp.ne.s32.totalorder %s2730_s7, %s2157_s22  ;;  %p2164_p0 = scmp.lt.s32.totalorder %s2730_s7, %s2162_s14 }
  0x19   : > { %v259_v19 = vpack.c.bf16 %v228_v12, %v227_v11  ;;  %379 = vmatpush1.bf16.msra.mxu0 %v367_v15  ;;  %572 = vmatpush1.bf16.msra.mxu1 %v373_v16  ;;  %v230_v24 = vld [vmem:[%s2316_s11 + $0x18] sm:$0xff]  ;;  %v231_v30 = vld [vmem:[%s2316_s11 + $0x20] sm:$0xff]  ;;  %v232_v31 = vld [vmem:[%s2316_s11 + $0x28] sm:$0xff]  ;;  %p2165_p1 = scmp.lt.s32.totalorder %s2163_s15, %s2157_s22 }
  0x1a   : > { %1793 = vmatprep.subr.bf16.mxu0 %v2061_v17  ;;  %1905 = vmatprep.subr.bf16.mxu1 %v2063_v18  ;;  %v260_v27 = vpack.c.bf16 %v230_v24, %v229_v23  ;;  %v261_v37 = vpack.c.bf16 %v232_v31, %v231_v30  ;;  %v233_v41 = vld [vmem:[%s2316_s11 + $0x30] sm:$0xff]  ;;  %v234_v42 = vld [vmem:[%s2316_s11 + $0x38] sm:$0xff]  ;;  %v235_v52 = vld [vmem:[%s2316_s11 + $0x40] sm:$0xff]  ;;  %p2159_p12 = pnand %p2158_p11, %p2294_p5 }
  0x1b   : > { %v262_v48 = vpack.c.bf16 %v234_v42, %v233_v41  ;;  %v236_v53 = vld [vmem:[%s2316_s11 + $0x48] sm:$0xff]  ;;  %v2087_v55 = vld [vmem:[%s2780_s3 + $0xf0] sm:$0xff]   ;;  %v2091_v60 = vld [vmem:[%s2780_s3 + $0xf8] sm:$0xff]   ;;  %p2166_p2 = por %p2165_p1, %p2164_p0 }
  0x1c   : > { %1721 = vmatmul.mubr.msk.bf16.vlgmr.msra.gmra.mrb[0].mxu0 %vm316_vm1, %v259_v19  ;;  %1738 = vmatmul.mubr.msk.bf16.vlgmr.msra.gmra.mrb[0].mxu1 %vm316_vm1, %v259_v19  ;;  %v2088_v56 = vld [vmem:[%s2780_s3 + $0xb0] sm:$0xff]   ;;  %v263_v59 = vpack.c.bf16 %v236_v53, %v235_v52  ;;  %v2092_v61 = vld [vmem:[%s2780_s3 + $0xb8] sm:$0xff]   ;;  %v239_v1 = vld [vmem:[%s2316_s11 + $0x60] sm:$0xff]  ;;  %p2160_p13 = pneg %p2159_p12 }
  0x1d   : > { %420 = vmatprep.mubr.bf16.mxu0 %v2222_v5  ;;  %613 = vmatprep.mubr.bf16.mxu1 %v2222_v5  ;;  %v237_v62 = vld [vmem:[%s2316_s11 + $0x50] sm:$0xff]  ;;  %v238_v63 = vld [vmem:[%s2316_s11 + $0x58] sm:$0xff]  ;;  %v240_v2 = vld [vmem:[%s2316_s11 + $0x68] sm:$0xff] }
  0x1e   : > { %1794 = vmatpush3.bf16.msra.mxu0 %v2062_v20  ;;  %1906 = vmatpush3.bf16.msra.mxu1 %v2064_v21  ;;  %v264_v0 = vpack.c.bf16 %v238_v63, %v237_v62  ;;  %v265_v3 = vpack.c.bf16 %v240_v2, %v239_v1  ;;  %v241_v6 = vld [vmem:[%s2316_s11 + $0x70] sm:$0xff]  ;;  %v242_v7 = vld [vmem:[%s2316_s11 + $0x78] sm:$0xff]  ;;  %v243_v9 = vld [vmem:[%s2316_s11 + $0x80] sm:$0xff]  ;;  %p2167_p3 = pnand %p2166_p2, %p2160_p13 }
  0x1f   : > { %1795 = vmatprep.subr.bf16.mxu0 %v2065_v22  ;;  %1907 = vmatprep.subr.bf16.mxu1 %v2067_v26  ;;  %v266_v8 = vpack.c.bf16 %v242_v7, %v241_v6  ;;  %v244_v10 = vld [vmem:[%s2316_s11 + $0x88] sm:$0xff]  ;;  %v245_v12 = vld [vmem:[%s2316_s11 + $0x90] sm:$0xff]  ;;  %v246_v13 = vld [vmem:[%s2316_s11 + $0x98] sm:$0xff] }
  0x20   : > { %v267_v11 = vpack.c.bf16 %v244_v10, %v243_v9  ;;  %v268_v14 = vpack.c.bf16 %v246_v13, %v245_v12  ;;  %v247_v15 = vld [vmem:[%s2316_s11 + $0xa0] sm:$0xff]  ;;  %v248_v16 = vld [vmem:[%s2316_s11 + $0xa8] sm:$0xff]  ;;  %v249_v18 = vld [vmem:[%s2316_s11 + $0xb0] sm:$0xff] }
  0x21   : > { %v269_v17 = vpack.c.bf16 %v248_v16, %v247_v15  ;;  %v250_v19 = vld [vmem:[%s2316_s11 + $0xb8] sm:$0xff]  ;;  %v251_v21 = vld [vmem:[%s2316_s11 + $0xc0] sm:$0xff]  ;;  %v252_v22 = vld [vmem:[%s2316_s11 + $0xc8] sm:$0xff] }
  0x22   : > { %1796 = vmatpush3.bf16.msra.mxu0 %v2066_v25  ;;  %1908 = vmatpush3.bf16.msra.mxu1 %v2068_v28  ;;  %v270_v20 = vpack.c.bf16 %v250_v19, %v249_v18  ;;  %v271_v23 = vpack.c.bf16 %v252_v22, %v251_v21  ;;  %v253_v24 = vld [vmem:[%s2316_s11 + $0xd0] sm:$0xff]  ;;  %v254_v25 = vld [vmem:[%s2316_s11 + $0xd8] sm:$0xff]  ;;  %v256_v28 = vld [vmem:[%s2316_s11 + $0xe8] sm:$0xff] }
  0x23   : > { %1797 = vmatprep.subr.bf16.mxu0 %v2069_v29  ;;  %1909 = vmatprep.subr.bf16.mxu1 %v2071_v33  ;;  %v272_v26 = vpack.c.bf16 %v254_v25, %v253_v24  ;;  %v257_v30 = vld [vmem:[%s2316_s11 + $0xf0] sm:$0xff]  ;;  %v258_v31 = vld [vmem:[%s2316_s11 + $0xf8] sm:$0xff]  ;;  %v280_v33 = vsub.s32 0, %v2308_v4 }
  0x24   : > { %1722 = vmatmul.mubr.msk.bf16.gmra.mrb[4].mxu0 %vm316_vm1, %v260_v27  ;;  %1739 = vmatmul.mubr.msk.bf16.gmra.mrb[4].mxu1 %vm316_vm1, %v260_v27  ;;  %v255_v27 = vld [vmem:[%s2316_s11 + $0xe0] sm:$0xff] }
  0x25   : > { %430 = vmatprep.mubr.bf16.mxu0 %v2222_v5  ;;  %623 = vmatprep.mubr.bf16.mxu1 %v2222_v5  ;;  %v273_v29 = vpack.c.bf16 %v256_v28, %v255_v27 }
  0x26   : > { %1798 = vmatpush3.bf16.msra.mxu0 %v2070_v32  ;;  %1910 = vmatpush3.bf16.msra.mxu1 %v2072_v34  ;;  %v274_v32 = vpack.c.bf16 %v258_v31, %v257_v30  ;;  %v288_v34 = vsub.s32 2, %v2308_v4 }
  0x27   : > { %1799 = vmatprep.subr.bf16.mxu0 %v2073_v35  ;;  %1911 = vmatprep.subr.bf16.mxu1 %v2075_v38  ;;  %v276_v35 = vld [vmem:[%s2779_s2] sm:$0xf] }
  0x28   : > { %v2517_v38 = vrot.slane %v276_v35, %v288_v34 }
  0x2a   : > { %1800 = vmatpush3.bf16.msra.mxu0 %v2074_v36  ;;  %1912 = vmatpush3.bf16.msra.mxu1 %v2076_v39  ;;  %v284_v36 = vsub.s32 1, %v2308_v4 }
  0x2b   : > { %1801 = vmatprep.subr.bf16.mxu0 %v2077_v40  ;;  %1913 = vmatprep.subr.bf16.mxu1 %v2079_v44 }
  0x2c   : > { %1723 = vmatmul.mubr.msk.bf16.gmra.mrb[8].mxu0 %vm316_vm1, %v261_v37  ;;  %1740 = vmatmul.mubr.msk.bf16.gmra.mrb[8].mxu1 %vm316_vm1, %v261_v37  ;;  %v292_v37 = vsub.s32 3, %v2308_v4  ;;  %v2519_v39 = vrot.slane %v276_v35, %v284_v36 }
  0x2d   : > { %440 = vmatprep.mubr.bf16.mxu0 %v2222_v5  ;;  %633 = vmatprep.mubr.bf16.mxu1 %v2222_v5 }
  0x2e   : > { %1802 = vmatpush3.bf16.msra.mxu0 %v2078_v43  ;;  %1914 = vmatpush3.bf16.msra.mxu1 %v2080_v45  ;;  %v2521_v40 = vrot.slane %v276_v35, %v292_v37 }
  0x2f   : > { %1803 = vmatprep.subr.bf16.mxu0 %v2081_v46  ;;  %1915 = vmatprep.subr.bf16.mxu1 %v2083_v49 }
  0x32   : > { %1804 = vmatpush3.bf16.msra.mxu0 %v2082_v47  ;;  %1916 = vmatpush3.bf16.msra.mxu1 %v2084_v50 }
  0x33   : > { %1805 = vmatprep.subr.bf16.mxu0 %v2085_v51  ;;  %1917 = vmatprep.subr.bf16.mxu1 %v2087_v55 }
  0x34   : > { %1724 = vmatmul.mubr.msk.bf16.gmra.mrb[12].mxu0 %vm316_vm1, %v262_v48  ;;  %1741 = vmatmul.mubr.msk.bf16.gmra.mrb[12].mxu1 %vm316_vm1, %v262_v48 }
  0x35   : > { %450 = vmatprep.mubr.bf16.mxu0 %v2222_v5  ;;  %643 = vmatprep.mubr.bf16.mxu1 %v2222_v5 }
  0x36   : > { %1806 = vmatpush3.bf16.msra.mxu0 %v2086_v54  ;;  %1918 = vmatpush3.bf16.msra.mxu1 %v2088_v56 }
  0x37   : > { %1807 = vmatprep.subr.bf16.mxu0 %v2089_v57  ;;  %1919 = vmatprep.subr.bf16.mxu1 %v2091_v60 }
  0x3a   : > { %1808 = vmatpush3.bf16.msra.mxu0 %v2090_v58  ;;  %1920 = vmatpush3.bf16.msra.mxu1 %v2092_v61 }
  0x3c   : > { %1725 = vmatmul.mubr.msk.bf16.gmra.mrb[16].mxu0 %vm316_vm1, %v263_v59  ;;  %1742 = vmatmul.mubr.msk.bf16.gmra.mrb[16].mxu1 %vm316_vm1, %v263_v59 }
  0x3d   : > { %460 = vmatprep.mubr.bf16.mxu0 %v2222_v5  ;;  %653 = vmatprep.mubr.bf16.mxu1 %v2222_v5 }
  0x44   : > { %1726 = vmatmul.mubr.msk.bf16.gmra.mrb[20].mxu0 %vm316_vm1, %v264_v0  ;;  %1743 = vmatmul.mubr.msk.bf16.gmra.mrb[20].mxu1 %vm316_vm1, %v264_v0 }
  0x45   : > { %470 = vmatprep.mubr.bf16.mxu0 %v2222_v5  ;;  %663 = vmatprep.mubr.bf16.mxu1 %v2222_v5 }
  0x4c   : > { %1727 = vmatmul.mubr.msk.bf16.gmra.mrb[24].mxu0 %vm316_vm1, %v265_v3  ;;  %1744 = vmatmul.mubr.msk.bf16.gmra.mrb[24].mxu1 %vm316_vm1, %v265_v3 }
  0x4d   : > { %480 = vmatprep.mubr.bf16.mxu0 %v2222_v5  ;;  %673 = vmatprep.mubr.bf16.mxu1 %v2222_v5 }
  0x54   : > { %1728 = vmatmul.mubr.msk.bf16.gmra.mrb[28].mxu0 %vm316_vm1, %v266_v8  ;;  %1745 = vmatmul.mubr.msk.bf16.gmra.mrb[28].mxu1 %vm316_vm1, %v266_v8 }
  0x55   : > { %490 = vmatprep.mubr.bf16.mxu0 %v2222_v5  ;;  %683 = vmatprep.mubr.bf16.mxu1 %v2222_v5 }
  0x5c   : > { %1729 = vmatmul.mubr.msk.bf16.gmra.mrb[32].mxu0 %vm316_vm1, %v267_v11  ;;  %1746 = vmatmul.mubr.msk.bf16.gmra.mrb[32].mxu1 %vm316_vm1, %v267_v11 }
  0x5d   : > { %500 = vmatprep.mubr.bf16.mxu0 %v2222_v5  ;;  %693 = vmatprep.mubr.bf16.mxu1 %v2222_v5 }
  0x64   : > { %1730 = vmatmul.mubr.msk.bf16.gmra.mrb[36].mxu0 %vm316_vm1, %v268_v14  ;;  %1747 = vmatmul.mubr.msk.bf16.gmra.mrb[36].mxu1 %vm316_vm1, %v268_v14 }
  0x65   : > { %510 = vmatprep.mubr.bf16.mxu0 %v2222_v5  ;;  %703 = vmatprep.mubr.bf16.mxu1 %v2222_v5 }
  0x6c   : > { %1731 = vmatmul.mubr.msk.bf16.gmra.mrb[40].mxu0 %vm316_vm1, %v269_v17  ;;  %1748 = vmatmul.mubr.msk.bf16.gmra.mrb[40].mxu1 %vm316_vm1, %v269_v17 }
  0x6d   : > { %520 = vmatprep.mubr.bf16.mxu0 %v2222_v5  ;;  %713 = vmatprep.mubr.bf16.mxu1 %v2222_v5 }
  0x74   : > { %1732 = vmatmul.mubr.msk.bf16.gmra.mrb[44].mxu0 %vm316_vm1, %v270_v20  ;;  %1749 = vmatmul.mubr.msk.bf16.gmra.mrb[44].mxu1 %vm316_vm1, %v270_v20 }
  0x75   : > { %530 = vmatprep.mubr.bf16.mxu0 %v2222_v5  ;;  %723 = vmatprep.mubr.bf16.mxu1 %v2222_v5 }
  0x7c   : > { %1733 = vmatmul.mubr.msk.bf16.gmra.mrb[48].mxu0 %vm316_vm1, %v271_v23  ;;  %1750 = vmatmul.mubr.msk.bf16.gmra.mrb[48].mxu1 %vm316_vm1, %v271_v23 }
  0x7d   : > { %540 = vmatprep.mubr.bf16.mxu0 %v2222_v5  ;;  %733 = vmatprep.mubr.bf16.mxu1 %v2222_v5 }
  0x84   : > { %1734 = vmatmul.mubr.msk.bf16.gmra.mrb[52].mxu0 %vm316_vm1, %v272_v26  ;;  %1751 = vmatmul.mubr.msk.bf16.gmra.mrb[52].mxu1 %vm316_vm1, %v272_v26 }
  0x85   : > { %550 = vmatprep.mubr.bf16.mxu0 %v2222_v5  ;;  %743 = vmatprep.mubr.bf16.mxu1 %v2222_v5 }
  0x8c   : > { %1735 = vmatmul.mubr.msk.bf16.gmra.mrb[56].mxu0 %vm316_vm1, %v273_v29  ;;  %1752 = vmatmul.mubr.msk.bf16.gmra.mrb[56].mxu1 %vm316_vm1, %v273_v29 }
  0x8d   : > { %560 = vmatprep.mubr.bf16.mxu0 %v2222_v5  ;;  %753 = vmatprep.mubr.bf16.mxu1 %v2222_v5  ;;  %v2515_v5 = vrot.slane %v276_v35, %v280_v33 }
  0x94   : > { %1736 = vmatmul.mubr.msk.bf16.gmra.mrb[60].mxu0 %vm316_vm1, %v274_v32  ;;  %1753 = vmatmul.mubr.msk.bf16.gmra.mrb[60].mxu1 %vm316_vm1, %v274_v32 }
  0xef   : > { %v412_v41 = vpop.f32.mrb[0].mxu0  ;;  %v605_v42 = vpop.f32.mrb[0].mxu1 }
  0xf0   : > { %v413_v43 = vadd.f32 %v412_v41, %v2515_v5  ;;  %v606_v44 = vadd.f32 %v605_v42, %v2517_v38  ;;  %v414_v45 = vpop.f32.mrb[1].mxu0  ;;  %v607_v46 = vpop.f32.mrb[1].mxu1 }
  0xf1   : > { %v415_v47 = vadd.f32 %v414_v45, %v2519_v39  ;;  %v608_v4 = vadd.f32 %v607_v46, %v2521_v40  ;;  %v416_v48 = vpop.f32.mrb[2].mxu0  ;;  %v609_v49 = vpop.f32.mrb[2].mxu1 }
  0xf2   : > { %v766_v50 = vmax.f32 %v606_v44, 0.0  ;;  %v417_v51 = vadd.f32 %v416_v48, %v2515_v5  ;;  %v610_v52 = vadd.f32 %v609_v49, %v2517_v38  ;;  %v418_v53 = vpop.f32.mrb[3].mxu0  ;;  %v611_v54 = vpop.f32.mrb[3].mxu1  ;;  %v764_v58 = vmax.f32 %v413_v43, 0.0 }
  0xf3   : > { %v767_v55 = vmax.f32 %v608_v4, 0.0  ;;  %v419_v56 = vadd.f32 %v418_v53, %v2519_v39  ;;  %v612_v57 = vadd.f32 %v611_v54, %v2521_v40  ;;  %v765_v61 = vmax.f32 %v415_v47, 0.0 }
  0xf4   : > { %v768_v59 = vmax.f32 %v417_v51, 0.0  ;;  %v770_v60 = vmax.f32 %v610_v52, 0.0 }
  0xf5   : > { %v769_v62 = vmax.f32 %v419_v56, 0.0  ;;  %v771_v63 = vmax.f32 %v612_v57, 0.0 }
  0xf6   : > { %v892_v0 = vpack.c.bf16 %v768_v59, %v764_v58  ;;  %v894_v1 = vpack.c.bf16 %v770_v60, %v766_v50 }
  0xf7   : > { %v893_v2 = vpack.c.bf16 %v769_v62, %v765_v61  ;;  %v895_v3 = vpack.c.bf16 %v771_v63, %v767_v55  ;;  %v422_v6 = vpop.f32.mrb[4].mxu0  ;;  %v615_v7 = vpop.f32.mrb[4].mxu1 }
  0xf8   : > { %v423_v8 = vadd.f32 %v422_v6, %v2515_v5  ;;  %v616_v9 = vadd.f32 %v615_v7, %v2517_v38  ;;  %v424_v10 = vpop.f32.mrb[5].mxu0  ;;  %v617_v11 = vpop.f32.mrb[5].mxu1 }
  0xf9   : > { %v425_v12 = vadd.f32 %v424_v10, %v2519_v39  ;;  %v618_v13 = vadd.f32 %v617_v11, %v2521_v40  ;;  %v426_v14 = vpop.f32.mrb[6].mxu0  ;;  %v619_v15 = vpop.f32.mrb[6].mxu1  ;;  %1251 = vmatprep.mubr.bf16.mxu0 %v893_v2  ;;  %1412 = vmatprep.mubr.bf16.mxu1 %v895_v3 }
  0xfa   : > { %v774_v16 = vmax.f32 %v616_v9, 0.0  ;;  %v427_v17 = vadd.f32 %v426_v14, %v2515_v5  ;;  %v620_v18 = vadd.f32 %v619_v15, %v2517_v38  ;;  %v428_v19 = vpop.f32.mrb[7].mxu0  ;;  %v621_v20 = vpop.f32.mrb[7].mxu1  ;;  %1252 = vmatmul.mubr.bf16.vlgmr.msra.gmra.mrb[64].mxu0 %v892_v0  ;;  %1413 = vmatmul.mubr.bf16.vlgmr.msra.gmra.mrb[64].mxu1 %v894_v1  ;;  %v772_v24 = vmax.f32 %v423_v8, 0.0 }
  0xfb   : > { %v775_v21 = vmax.f32 %v618_v13, 0.0  ;;  %v429_v22 = vadd.f32 %v428_v19, %v2519_v39  ;;  %v622_v23 = vadd.f32 %v621_v20, %v2521_v40  ;;  %v773_v27 = vmax.f32 %v425_v12, 0.0 }
  0xfc   : > { %v776_v25 = vmax.f32 %v427_v17, 0.0  ;;  %v778_v26 = vmax.f32 %v620_v18, 0.0 }
  0xfd   : > { %v777_v28 = vmax.f32 %v429_v22, 0.0  ;;  %v779_v29 = vmax.f32 %v622_v23, 0.0 }
  0xfe   : > { %v896_v30 = vpack.c.bf16 %v776_v25, %v772_v24  ;;  %v898_v31 = vpack.c.bf16 %v778_v26, %v774_v16 }
  0xff   : > { %v897_v32 = vpack.c.bf16 %v777_v28, %v773_v27  ;;  %v899_v33 = vpack.c.bf16 %v779_v29, %v775_v21  ;;  %v432_v34 = vpop.f32.mrb[8].mxu0  ;;  %v625_v35 = vpop.f32.mrb[8].mxu1 }
 0x100   : > { %v433_v36 = vadd.f32 %v432_v34, %v2515_v5  ;;  %v626_v37 = vadd.f32 %v625_v35, %v2517_v38  ;;  %v434_v41 = vpop.f32.mrb[9].mxu0  ;;  %v627_v42 = vpop.f32.mrb[9].mxu1 }
 0x101   : > { %v435_v43 = vadd.f32 %v434_v41, %v2519_v39  ;;  %v628_v44 = vadd.f32 %v627_v42, %v2521_v40  ;;  %v436_v45 = vpop.f32.mrb[10].mxu0  ;;  %v629_v46 = vpop.f32.mrb[10].mxu1  ;;  %1259 = vmatprep.mubr.bf16.mxu0 %v897_v32  ;;  %1420 = vmatprep.mubr.bf16.mxu1 %v899_v33 }
 0x102   : > { %v782_v47 = vmax.f32 %v626_v37, 0.0  ;;  %v437_v4 = vadd.f32 %v436_v45, %v2515_v5  ;;  %v630_v48 = vadd.f32 %v629_v46, %v2517_v38  ;;  %v438_v49 = vpop.f32.mrb[11].mxu0  ;;  %v631_v50 = vpop.f32.mrb[11].mxu1  ;;  %1260 = vmatmul.mubr.bf16.gmra.mrb[68].mxu0 %v896_v30  ;;  %1421 = vmatmul.mubr.bf16.gmra.mrb[68].mxu1 %v898_v31  ;;  %v780_v54 = vmax.f32 %v433_v36, 0.0 }
 0x103   : > { %v783_v51 = vmax.f32 %v628_v44, 0.0  ;;  %v439_v52 = vadd.f32 %v438_v49, %v2519_v39  ;;  %v632_v53 = vadd.f32 %v631_v50, %v2521_v40  ;;  %v781_v57 = vmax.f32 %v435_v43, 0.0 }
 0x104   : > { %v784_v55 = vmax.f32 %v437_v4, 0.0  ;;  %v786_v56 = vmax.f32 %v630_v48, 0.0 }
 0x105   : > { %v785_v58 = vmax.f32 %v439_v52, 0.0  ;;  %v787_v59 = vmax.f32 %v632_v53, 0.0 }
 0x106   : > { %v900_v60 = vpack.c.bf16 %v784_v55, %v780_v54  ;;  %v902_v61 = vpack.c.bf16 %v786_v56, %v782_v47 }
 0x107   : > { %v901_v62 = vpack.c.bf16 %v785_v58, %v781_v57  ;;  %v903_v63 = vpack.c.bf16 %v787_v59, %v783_v51  ;;  %v442_v0 = vpop.f32.mrb[12].mxu0  ;;  %v635_v1 = vpop.f32.mrb[12].mxu1 }
 0x108   : > { %v443_v2 = vadd.f32 %v442_v0, %v2515_v5  ;;  %v636_v3 = vadd.f32 %v635_v1, %v2517_v38  ;;  %v444_v6 = vpop.f32.mrb[13].mxu0  ;;  %v637_v7 = vpop.f32.mrb[13].mxu1 }
 0x109   : > { %v445_v8 = vadd.f32 %v444_v6, %v2519_v39  ;;  %v638_v9 = vadd.f32 %v637_v7, %v2521_v40  ;;  %v446_v10 = vpop.f32.mrb[14].mxu0  ;;  %v639_v11 = vpop.f32.mrb[14].mxu1  ;;  %1267 = vmatprep.mubr.bf16.mxu0 %v901_v62  ;;  %1428 = vmatprep.mubr.bf16.mxu1 %v903_v63 }
 0x10a   : > { %v790_v12 = vmax.f32 %v636_v3, 0.0  ;;  %v447_v13 = vadd.f32 %v446_v10, %v2515_v5  ;;  %v640_v14 = vadd.f32 %v639_v11, %v2517_v38  ;;  %v448_v15 = vpop.f32.mrb[15].mxu0  ;;  %v641_v16 = vpop.f32.mrb[15].mxu1  ;;  %1268 = vmatmul.mubr.bf16.gmra.mrb[72].mxu0 %v900_v60  ;;  %1429 = vmatmul.mubr.bf16.gmra.mrb[72].mxu1 %v902_v61  ;;  %v788_v20 = vmax.f32 %v443_v2, 0.0 }
 0x10b   : > { %v791_v17 = vmax.f32 %v638_v9, 0.0  ;;  %v449_v18 = vadd.f32 %v448_v15, %v2519_v39  ;;  %v642_v19 = vadd.f32 %v641_v16, %v2521_v40  ;;  %v789_v23 = vmax.f32 %v445_v8, 0.0 }
 0x10c   : > { %v792_v21 = vmax.f32 %v447_v13, 0.0  ;;  %v794_v22 = vmax.f32 %v640_v14, 0.0 }
 0x10d   : > { %v793_v24 = vmax.f32 %v449_v18, 0.0  ;;  %v795_v25 = vmax.f32 %v642_v19, 0.0 }
 0x10e   : > { %v904_v26 = vpack.c.bf16 %v792_v21, %v788_v20  ;;  %v906_v27 = vpack.c.bf16 %v794_v22, %v790_v12 }
 0x10f   : > { %v905_v28 = vpack.c.bf16 %v793_v24, %v789_v23  ;;  %v907_v29 = vpack.c.bf16 %v795_v25, %v791_v17  ;;  %v452_v30 = vpop.f32.mrb[16].mxu0  ;;  %v645_v31 = vpop.f32.mrb[16].mxu1 }
 0x110   : > { %v453_v32 = vadd.f32 %v452_v30, %v2515_v5  ;;  %v646_v33 = vadd.f32 %v645_v31, %v2517_v38  ;;  %v454_v34 = vpop.f32.mrb[17].mxu0  ;;  %v647_v35 = vpop.f32.mrb[17].mxu1 }
 0x111   : > { %v455_v36 = vadd.f32 %v454_v34, %v2519_v39  ;;  %v648_v37 = vadd.f32 %v647_v35, %v2521_v40  ;;  %v456_v41 = vpop.f32.mrb[18].mxu0  ;;  %v649_v42 = vpop.f32.mrb[18].mxu1  ;;  %1275 = vmatprep.mubr.bf16.mxu0 %v905_v28  ;;  %1436 = vmatprep.mubr.bf16.mxu1 %v907_v29 }
 0x112   : > { %v798_v43 = vmax.f32 %v646_v33, 0.0  ;;  %v457_v44 = vadd.f32 %v456_v41, %v2515_v5  ;;  %v650_v45 = vadd.f32 %v649_v42, %v2517_v38  ;;  %v458_v46 = vpop.f32.mrb[19].mxu0  ;;  %v651_v47 = vpop.f32.mrb[19].mxu1  ;;  %1276 = vmatmul.mubr.bf16.gmra.mrb[76].mxu0 %v904_v26  ;;  %1437 = vmatmul.mubr.bf16.gmra.mrb[76].mxu1 %v906_v27  ;;  %v796_v50 = vmax.f32 %v453_v32, 0.0 }
 0x113   : > { %v799_v4 = vmax.f32 %v648_v37, 0.0  ;;  %v459_v48 = vadd.f32 %v458_v46, %v2519_v39  ;;  %v652_v49 = vadd.f32 %v651_v47, %v2521_v40  ;;  %v797_v53 = vmax.f32 %v455_v36, 0.0 }
 0x114   : > { %v800_v51 = vmax.f32 %v457_v44, 0.0  ;;  %v802_v52 = vmax.f32 %v650_v45, 0.0 }
 0x115   : > { %v801_v54 = vmax.f32 %v459_v48, 0.0  ;;  %v803_v55 = vmax.f32 %v652_v49, 0.0 }
 0x116   : > { %v908_v56 = vpack.c.bf16 %v800_v51, %v796_v50  ;;  %v910_v57 = vpack.c.bf16 %v802_v52, %v798_v43 }
 0x117   : > { %v909_v58 = vpack.c.bf16 %v801_v54, %v797_v53  ;;  %v911_v59 = vpack.c.bf16 %v803_v55, %v799_v4  ;;  %v462_v60 = vpop.f32.mrb[20].mxu0  ;;  %v655_v61 = vpop.f32.mrb[20].mxu1 }
 0x118   : > { %v463_v62 = vadd.f32 %v462_v60, %v2515_v5  ;;  %v656_v63 = vadd.f32 %v655_v61, %v2517_v38  ;;  %v464_v0 = vpop.f32.mrb[21].mxu0  ;;  %v657_v1 = vpop.f32.mrb[21].mxu1 }
 0x119   : > { %v465_v2 = vadd.f32 %v464_v0, %v2519_v39  ;;  %v658_v3 = vadd.f32 %v657_v1, %v2521_v40  ;;  %v466_v6 = vpop.f32.mrb[22].mxu0  ;;  %v659_v7 = vpop.f32.mrb[22].mxu1  ;;  %1283 = vmatprep.mubr.bf16.mxu0 %v909_v58  ;;  %1444 = vmatprep.mubr.bf16.mxu1 %v911_v59 }
 0x11a   : > { %v806_v8 = vmax.f32 %v656_v63, 0.0  ;;  %v467_v9 = vadd.f32 %v466_v6, %v2515_v5  ;;  %v660_v10 = vadd.f32 %v659_v7, %v2517_v38  ;;  %v468_v11 = vpop.f32.mrb[23].mxu0  ;;  %v661_v12 = vpop.f32.mrb[23].mxu1  ;;  %1284 = vmatmul.mubr.bf16.gmra.mrb[80].mxu0 %v908_v56  ;;  %1445 = vmatmul.mubr.bf16.gmra.mrb[80].mxu1 %v910_v57  ;;  %v804_v16 = vmax.f32 %v463_v62, 0.0 }
 0x11b   : > { %v807_v13 = vmax.f32 %v658_v3, 0.0  ;;  %v469_v14 = vadd.f32 %v468_v11, %v2519_v39  ;;  %v662_v15 = vadd.f32 %v661_v12, %v2521_v40  ;;  %v805_v19 = vmax.f32 %v465_v2, 0.0 }
 0x11c   : > { %v808_v17 = vmax.f32 %v467_v9, 0.0  ;;  %v810_v18 = vmax.f32 %v660_v10, 0.0 }
 0x11d   : > { %v809_v20 = vmax.f32 %v469_v14, 0.0  ;;  %v811_v21 = vmax.f32 %v662_v15, 0.0 }
 0x11e   : > { %v912_v22 = vpack.c.bf16 %v808_v17, %v804_v16  ;;  %v914_v23 = vpack.c.bf16 %v810_v18, %v806_v8 }
 0x11f   : > { %v913_v24 = vpack.c.bf16 %v809_v20, %v805_v19  ;;  %v915_v25 = vpack.c.bf16 %v811_v21, %v807_v13  ;;  %v472_v26 = vpop.f32.mrb[24].mxu0  ;;  %v665_v27 = vpop.f32.mrb[24].mxu1 }
 0x120   : > { %v473_v28 = vadd.f32 %v472_v26, %v2515_v5  ;;  %v666_v29 = vadd.f32 %v665_v27, %v2517_v38  ;;  %v474_v30 = vpop.f32.mrb[25].mxu0  ;;  %v667_v31 = vpop.f32.mrb[25].mxu1 }
 0x121   : > { %v475_v32 = vadd.f32 %v474_v30, %v2519_v39  ;;  %v668_v33 = vadd.f32 %v667_v31, %v2521_v40  ;;  %v476_v34 = vpop.f32.mrb[26].mxu0  ;;  %v669_v35 = vpop.f32.mrb[26].mxu1  ;;  %1291 = vmatprep.mubr.bf16.mxu0 %v913_v24  ;;  %1452 = vmatprep.mubr.bf16.mxu1 %v915_v25 }
 0x122   : > { %v814_v36 = vmax.f32 %v666_v29, 0.0  ;;  %v477_v37 = vadd.f32 %v476_v34, %v2515_v5  ;;  %v670_v41 = vadd.f32 %v669_v35, %v2517_v38  ;;  %v478_v42 = vpop.f32.mrb[27].mxu0  ;;  %v671_v43 = vpop.f32.mrb[27].mxu1  ;;  %1292 = vmatmul.mubr.bf16.gmra.mrb[84].mxu0 %v912_v22  ;;  %1453 = vmatmul.mubr.bf16.gmra.mrb[84].mxu1 %v914_v23  ;;  %v812_v47 = vmax.f32 %v473_v28, 0.0 }
 0x123   : > { %v815_v44 = vmax.f32 %v668_v33, 0.0  ;;  %v479_v45 = vadd.f32 %v478_v42, %v2519_v39  ;;  %v672_v46 = vadd.f32 %v671_v43, %v2521_v40  ;;  %v813_v49 = vmax.f32 %v475_v32, 0.0 }
 0x124   : > { %v816_v4 = vmax.f32 %v477_v37, 0.0  ;;  %v818_v48 = vmax.f32 %v670_v41, 0.0 }
 0x125   : > { %v817_v50 = vmax.f32 %v479_v45, 0.0  ;;  %v819_v51 = vmax.f32 %v672_v46, 0.0 }
 0x126   : > { %v916_v52 = vpack.c.bf16 %v816_v4, %v812_v47  ;;  %v918_v53 = vpack.c.bf16 %v818_v48, %v814_v36 }
 0x127   : > { %v917_v54 = vpack.c.bf16 %v817_v50, %v813_v49  ;;  %v919_v55 = vpack.c.bf16 %v819_v51, %v815_v44  ;;  %v482_v56 = vpop.f32.mrb[28].mxu0  ;;  %v675_v57 = vpop.f32.mrb[28].mxu1 }
 0x128   : > { %v483_v58 = vadd.f32 %v482_v56, %v2515_v5  ;;  %v676_v59 = vadd.f32 %v675_v57, %v2517_v38  ;;  %v484_v60 = vpop.f32.mrb[29].mxu0  ;;  %v677_v61 = vpop.f32.mrb[29].mxu1 }
 0x129   : > { %v485_v62 = vadd.f32 %v484_v60, %v2519_v39  ;;  %v678_v63 = vadd.f32 %v677_v61, %v2521_v40  ;;  %v486_v0 = vpop.f32.mrb[30].mxu0  ;;  %v679_v1 = vpop.f32.mrb[30].mxu1  ;;  %1299 = vmatprep.mubr.bf16.mxu0 %v917_v54  ;;  %1460 = vmatprep.mubr.bf16.mxu1 %v919_v55 }
 0x12a   : > { %v822_v2 = vmax.f32 %v676_v59, 0.0  ;;  %v487_v3 = vadd.f32 %v486_v0, %v2515_v5  ;;  %v680_v6 = vadd.f32 %v679_v1, %v2517_v38  ;;  %v488_v7 = vpop.f32.mrb[31].mxu0  ;;  %v681_v8 = vpop.f32.mrb[31].mxu1  ;;  %1300 = vmatmul.mubr.bf16.gmra.mrb[88].mxu0 %v916_v52  ;;  %1461 = vmatmul.mubr.bf16.gmra.mrb[88].mxu1 %v918_v53  ;;  %v820_v12 = vmax.f32 %v483_v58, 0.0 }
 0x12b   : > { %v823_v9 = vmax.f32 %v678_v63, 0.0  ;;  %v489_v10 = vadd.f32 %v488_v7, %v2519_v39  ;;  %v682_v11 = vadd.f32 %v681_v8, %v2521_v40  ;;  %v821_v15 = vmax.f32 %v485_v62, 0.0 }
 0x12c   : > { %v824_v13 = vmax.f32 %v487_v3, 0.0  ;;  %v826_v14 = vmax.f32 %v680_v6, 0.0 }
 0x12d   : > { %v825_v16 = vmax.f32 %v489_v10, 0.0  ;;  %v827_v17 = vmax.f32 %v682_v11, 0.0 }
 0x12e   : > { %v920_v18 = vpack.c.bf16 %v824_v13, %v820_v12  ;;  %v922_v19 = vpack.c.bf16 %v826_v14, %v822_v2 }
 0x12f   : > { %v921_v20 = vpack.c.bf16 %v825_v16, %v821_v15  ;;  %v923_v21 = vpack.c.bf16 %v827_v17, %v823_v9  ;;  %v492_v22 = vpop.f32.mrb[32].mxu0  ;;  %v685_v23 = vpop.f32.mrb[32].mxu1 }
 0x130   : > { %v493_v24 = vadd.f32 %v492_v22, %v2515_v5  ;;  %v686_v25 = vadd.f32 %v685_v23, %v2517_v38  ;;  %v494_v26 = vpop.f32.mrb[33].mxu0  ;;  %v687_v27 = vpop.f32.mrb[33].mxu1 }
 0x131   : > { %v495_v28 = vadd.f32 %v494_v26, %v2519_v39  ;;  %v688_v29 = vadd.f32 %v687_v27, %v2521_v40  ;;  %v496_v30 = vpop.f32.mrb[34].mxu0  ;;  %v689_v31 = vpop.f32.mrb[34].mxu1  ;;  %1307 = vmatprep.mubr.bf16.mxu0 %v921_v20  ;;  %1468 = vmatprep.mubr.bf16.mxu1 %v923_v21 }
 0x132   : > { %v830_v32 = vmax.f32 %v686_v25, 0.0  ;;  %v497_v33 = vadd.f32 %v496_v30, %v2515_v5  ;;  %v690_v34 = vadd.f32 %v689_v31, %v2517_v38  ;;  %v498_v35 = vpop.f32.mrb[35].mxu0  ;;  %v691_v36 = vpop.f32.mrb[35].mxu1  ;;  %1308 = vmatmul.mubr.bf16.gmra.mrb[92].mxu0 %v920_v18  ;;  %1469 = vmatmul.mubr.bf16.gmra.mrb[92].mxu1 %v922_v19  ;;  %v828_v43 = vmax.f32 %v493_v24, 0.0 }
 0x133   : > { %v831_v37 = vmax.f32 %v688_v29, 0.0  ;;  %v499_v41 = vadd.f32 %v498_v35, %v2519_v39  ;;  %v692_v42 = vadd.f32 %v691_v36, %v2521_v40  ;;  %v829_v46 = vmax.f32 %v495_v28, 0.0 }
 0x134   : > { %v832_v44 = vmax.f32 %v497_v33, 0.0  ;;  %v834_v45 = vmax.f32 %v690_v34, 0.0 }
 0x135   : > { %v833_v47 = vmax.f32 %v499_v41, 0.0  ;;  %v835_v4 = vmax.f32 %v692_v42, 0.0 }
 0x136   : > { %v924_v48 = vpack.c.bf16 %v832_v44, %v828_v43  ;;  %v926_v49 = vpack.c.bf16 %v834_v45, %v830_v32 }
 0x137   : > { %v925_v50 = vpack.c.bf16 %v833_v47, %v829_v46  ;;  %v927_v51 = vpack.c.bf16 %v835_v4, %v831_v37  ;;  %v502_v52 = vpop.f32.mrb[36].mxu0  ;;  %v695_v53 = vpop.f32.mrb[36].mxu1 }
 0x138   : > { %v503_v54 = vadd.f32 %v502_v52, %v2515_v5  ;;  %v696_v55 = vadd.f32 %v695_v53, %v2517_v38  ;;  %v504_v56 = vpop.f32.mrb[37].mxu0  ;;  %v697_v57 = vpop.f32.mrb[37].mxu1 }
 0x139   : > { %v505_v58 = vadd.f32 %v504_v56, %v2519_v39  ;;  %v698_v59 = vadd.f32 %v697_v57, %v2521_v40  ;;  %v506_v60 = vpop.f32.mrb[38].mxu0  ;;  %v699_v61 = vpop.f32.mrb[38].mxu1  ;;  %1315 = vmatprep.mubr.bf16.mxu0 %v925_v50  ;;  %1476 = vmatprep.mubr.bf16.mxu1 %v927_v51 }
 0x13a   : > { %v838_v62 = vmax.f32 %v696_v55, 0.0  ;;  %v507_v63 = vadd.f32 %v506_v60, %v2515_v5  ;;  %v700_v0 = vadd.f32 %v699_v61, %v2517_v38  ;;  %v508_v1 = vpop.f32.mrb[39].mxu0  ;;  %v701_v2 = vpop.f32.mrb[39].mxu1  ;;  %1316 = vmatmul.mubr.bf16.gmra.mrb[96].mxu0 %v924_v48  ;;  %1477 = vmatmul.mubr.bf16.gmra.mrb[96].mxu1 %v926_v49  ;;  %v836_v8 = vmax.f32 %v503_v54, 0.0 }
 0x13b   : > { %v839_v3 = vmax.f32 %v698_v59, 0.0  ;;  %v509_v6 = vadd.f32 %v508_v1, %v2519_v39  ;;  %v702_v7 = vadd.f32 %v701_v2, %v2521_v40  ;;  %v837_v11 = vmax.f32 %v505_v58, 0.0 }
 0x13c   : > { %v840_v9 = vmax.f32 %v507_v63, 0.0  ;;  %v842_v10 = vmax.f32 %v700_v0, 0.0 }
 0x13d   : > { %v841_v12 = vmax.f32 %v509_v6, 0.0  ;;  %v843_v13 = vmax.f32 %v702_v7, 0.0 }
 0x13e   : > { %v928_v14 = vpack.c.bf16 %v840_v9, %v836_v8  ;;  %v930_v15 = vpack.c.bf16 %v842_v10, %v838_v62 }
 0x13f   : > { %v929_v16 = vpack.c.bf16 %v841_v12, %v837_v11  ;;  %v931_v17 = vpack.c.bf16 %v843_v13, %v839_v3  ;;  %v512_v18 = vpop.f32.mrb[40].mxu0  ;;  %v705_v19 = vpop.f32.mrb[40].mxu1 }
 0x140   : > { %v513_v20 = vadd.f32 %v512_v18, %v2515_v5  ;;  %v706_v21 = vadd.f32 %v705_v19, %v2517_v38  ;;  %v514_v22 = vpop.f32.mrb[41].mxu0  ;;  %v707_v23 = vpop.f32.mrb[41].mxu1 }
 0x141   : > { %v515_v24 = vadd.f32 %v514_v22, %v2519_v39  ;;  %v708_v25 = vadd.f32 %v707_v23, %v2521_v40  ;;  %v516_v26 = vpop.f32.mrb[42].mxu0  ;;  %v709_v27 = vpop.f32.mrb[42].mxu1  ;;  %1323 = vmatprep.mubr.bf16.mxu0 %v929_v16  ;;  %1484 = vmatprep.mubr.bf16.mxu1 %v931_v17 }
 0x142   : > { %v846_v28 = vmax.f32 %v706_v21, 0.0  ;;  %v517_v29 = vadd.f32 %v516_v26, %v2515_v5  ;;  %v710_v30 = vadd.f32 %v709_v27, %v2517_v38  ;;  %v518_v31 = vpop.f32.mrb[43].mxu0  ;;  %v711_v32 = vpop.f32.mrb[43].mxu1  ;;  %1324 = vmatmul.mubr.bf16.gmra.mrb[100].mxu0 %v928_v14  ;;  %1485 = vmatmul.mubr.bf16.gmra.mrb[100].mxu1 %v930_v15  ;;  %v844_v36 = vmax.f32 %v513_v20, 0.0 }
 0x143   : > { %v847_v33 = vmax.f32 %v708_v25, 0.0  ;;  %v519_v34 = vadd.f32 %v518_v31, %v2519_v39  ;;  %v712_v35 = vadd.f32 %v711_v32, %v2521_v40  ;;  %v845_v42 = vmax.f32 %v515_v24, 0.0 }
 0x144   : > { %v848_v37 = vmax.f32 %v517_v29, 0.0  ;;  %v850_v41 = vmax.f32 %v710_v30, 0.0 }
 0x145   : > { %v849_v43 = vmax.f32 %v519_v34, 0.0  ;;  %v851_v44 = vmax.f32 %v712_v35, 0.0 }
 0x146   : > { %v932_v45 = vpack.c.bf16 %v848_v37, %v844_v36  ;;  %v934_v46 = vpack.c.bf16 %v850_v41, %v846_v28 }
 0x147   : > { %v933_v47 = vpack.c.bf16 %v849_v43, %v845_v42  ;;  %v935_v4 = vpack.c.bf16 %v851_v44, %v847_v33  ;;  %v522_v48 = vpop.f32.mrb[44].mxu0  ;;  %v715_v49 = vpop.f32.mrb[44].mxu1 }
 0x148   : > { %v523_v50 = vadd.f32 %v522_v48, %v2515_v5  ;;  %v716_v51 = vadd.f32 %v715_v49, %v2517_v38  ;;  %v524_v52 = vpop.f32.mrb[45].mxu0  ;;  %v717_v53 = vpop.f32.mrb[45].mxu1 }
 0x149   : > { %v525_v54 = vadd.f32 %v524_v52, %v2519_v39  ;;  %v718_v55 = vadd.f32 %v717_v53, %v2521_v40  ;;  %v526_v56 = vpop.f32.mrb[46].mxu0  ;;  %v719_v57 = vpop.f32.mrb[46].mxu1  ;;  %1331 = vmatprep.mubr.bf16.mxu0 %v933_v47  ;;  %1492 = vmatprep.mubr.bf16.mxu1 %v935_v4 }
 0x14a   : > { %v854_v58 = vmax.f32 %v716_v51, 0.0  ;;  %v527_v59 = vadd.f32 %v526_v56, %v2515_v5  ;;  %v720_v60 = vadd.f32 %v719_v57, %v2517_v38  ;;  %v528_v61 = vpop.f32.mrb[47].mxu0  ;;  %v721_v62 = vpop.f32.mrb[47].mxu1  ;;  %1332 = vmatmul.mubr.bf16.gmra.mrb[104].mxu0 %v932_v45  ;;  %1493 = vmatmul.mubr.bf16.gmra.mrb[104].mxu1 %v934_v46  ;;  %v852_v2 = vmax.f32 %v523_v50, 0.0 }
 0x14b   : > { %v855_v63 = vmax.f32 %v718_v55, 0.0  ;;  %v529_v0 = vadd.f32 %v528_v61, %v2519_v39  ;;  %v722_v1 = vadd.f32 %v721_v62, %v2521_v40  ;;  %v853_v7 = vmax.f32 %v525_v54, 0.0 }
 0x14c   : > { %v856_v3 = vmax.f32 %v527_v59, 0.0  ;;  %v858_v6 = vmax.f32 %v720_v60, 0.0 }
 0x14d   : > { %v857_v8 = vmax.f32 %v529_v0, 0.0  ;;  %v859_v9 = vmax.f32 %v722_v1, 0.0 }
 0x14e   : > { %v936_v10 = vpack.c.bf16 %v856_v3, %v852_v2  ;;  %v938_v11 = vpack.c.bf16 %v858_v6, %v854_v58 }
 0x14f   : > { %v937_v12 = vpack.c.bf16 %v857_v8, %v853_v7  ;;  %v939_v13 = vpack.c.bf16 %v859_v9, %v855_v63  ;;  %v532_v14 = vpop.f32.mrb[48].mxu0  ;;  %v725_v15 = vpop.f32.mrb[48].mxu1 }
 0x150   : > { %v533_v16 = vadd.f32 %v532_v14, %v2515_v5  ;;  %v726_v17 = vadd.f32 %v725_v15, %v2517_v38  ;;  %v534_v18 = vpop.f32.mrb[49].mxu0  ;;  %v727_v19 = vpop.f32.mrb[49].mxu1 }
 0x151   : > { %v535_v20 = vadd.f32 %v534_v18, %v2519_v39  ;;  %v728_v21 = vadd.f32 %v727_v19, %v2521_v40  ;;  %v536_v22 = vpop.f32.mrb[50].mxu0  ;;  %v729_v23 = vpop.f32.mrb[50].mxu1  ;;  %1339 = vmatprep.mubr.bf16.mxu0 %v937_v12  ;;  %1500 = vmatprep.mubr.bf16.mxu1 %v939_v13 }
 0x152   : > { %v862_v24 = vmax.f32 %v726_v17, 0.0  ;;  %v537_v25 = vadd.f32 %v536_v22, %v2515_v5  ;;  %v730_v26 = vadd.f32 %v729_v23, %v2517_v38  ;;  %v538_v27 = vpop.f32.mrb[51].mxu0  ;;  %v731_v28 = vpop.f32.mrb[51].mxu1  ;;  %1340 = vmatmul.mubr.bf16.gmra.mrb[108].mxu0 %v936_v10  ;;  %1501 = vmatmul.mubr.bf16.gmra.mrb[108].mxu1 %v938_v11  ;;  %v860_v32 = vmax.f32 %v533_v16, 0.0 }
 0x153   : > { %v863_v29 = vmax.f32 %v728_v21, 0.0  ;;  %v539_v30 = vadd.f32 %v538_v27, %v2519_v39  ;;  %v732_v31 = vadd.f32 %v731_v28, %v2521_v40  ;;  %v861_v35 = vmax.f32 %v535_v20, 0.0 }
 0x154   : > { %v864_v33 = vmax.f32 %v537_v25, 0.0  ;;  %v866_v34 = vmax.f32 %v730_v26, 0.0 }
 0x155   : > { %v865_v36 = vmax.f32 %v539_v30, 0.0  ;;  %v867_v37 = vmax.f32 %v732_v31, 0.0 }
 0x156   : > { %v940_v41 = vpack.c.bf16 %v864_v33, %v860_v32  ;;  %v942_v42 = vpack.c.bf16 %v866_v34, %v862_v24 }
 0x157   : > { %v941_v43 = vpack.c.bf16 %v865_v36, %v861_v35  ;;  %v943_v44 = vpack.c.bf16 %v867_v37, %v863_v29  ;;  %v542_v45 = vpop.f32.mrb[52].mxu0  ;;  %v735_v46 = vpop.f32.mrb[52].mxu1 }
 0x158   : > { %v543_v47 = vadd.f32 %v542_v45, %v2515_v5  ;;  %v736_v4 = vadd.f32 %v735_v46, %v2517_v38  ;;  %v544_v48 = vpop.f32.mrb[53].mxu0  ;;  %v737_v49 = vpop.f32.mrb[53].mxu1 }
 0x159   : > { %v545_v50 = vadd.f32 %v544_v48, %v2519_v39  ;;  %v738_v51 = vadd.f32 %v737_v49, %v2521_v40  ;;  %v546_v52 = vpop.f32.mrb[54].mxu0  ;;  %v739_v53 = vpop.f32.mrb[54].mxu1  ;;  %1347 = vmatprep.mubr.bf16.mxu0 %v941_v43  ;;  %1508 = vmatprep.mubr.bf16.mxu1 %v943_v44 }
 0x15a   : > { %v870_v54 = vmax.f32 %v736_v4, 0.0  ;;  %v547_v55 = vadd.f32 %v546_v52, %v2515_v5  ;;  %v740_v56 = vadd.f32 %v739_v53, %v2517_v38  ;;  %v548_v57 = vpop.f32.mrb[55].mxu0  ;;  %v741_v58 = vpop.f32.mrb[55].mxu1  ;;  %1348 = vmatmul.mubr.bf16.gmra.mrb[112].mxu0 %v940_v41  ;;  %1509 = vmatmul.mubr.bf16.gmra.mrb[112].mxu1 %v942_v42  ;;  %v868_v62 = vmax.f32 %v543_v47, 0.0 }
 0x15b   : > { %v871_v59 = vmax.f32 %v738_v51, 0.0  ;;  %v549_v60 = vadd.f32 %v548_v57, %v2519_v39  ;;  %v742_v61 = vadd.f32 %v741_v58, %v2521_v40  ;;  %v869_v1 = vmax.f32 %v545_v50, 0.0 }
 0x15c   : > { %v872_v63 = vmax.f32 %v547_v55, 0.0  ;;  %v874_v0 = vmax.f32 %v740_v56, 0.0 }
 0x15d   : > { %v873_v2 = vmax.f32 %v549_v60, 0.0  ;;  %v875_v3 = vmax.f32 %v742_v61, 0.0 }
 0x15e   : > { %v944_v6 = vpack.c.bf16 %v872_v63, %v868_v62  ;;  %v946_v7 = vpack.c.bf16 %v874_v0, %v870_v54 }
 0x15f   : > { %v945_v8 = vpack.c.bf16 %v873_v2, %v869_v1  ;;  %v947_v9 = vpack.c.bf16 %v875_v3, %v871_v59  ;;  %v552_v10 = vpop.f32.mrb[56].mxu0  ;;  %v745_v11 = vpop.f32.mrb[56].mxu1 }
 0x160   : > { %v553_v12 = vadd.f32 %v552_v10, %v2515_v5  ;;  %v746_v13 = vadd.f32 %v745_v11, %v2517_v38  ;;  %v554_v14 = vpop.f32.mrb[57].mxu0  ;;  %v747_v15 = vpop.f32.mrb[57].mxu1 }
 0x161   : > { %v555_v16 = vadd.f32 %v554_v14, %v2519_v39  ;;  %v748_v17 = vadd.f32 %v747_v15, %v2521_v40  ;;  %v556_v18 = vpop.f32.mrb[58].mxu0  ;;  %v749_v19 = vpop.f32.mrb[58].mxu1  ;;  %1355 = vmatprep.mubr.bf16.mxu0 %v945_v8  ;;  %1516 = vmatprep.mubr.bf16.mxu1 %v947_v9 }
 0x162   : > { %v878_v20 = vmax.f32 %v746_v13, 0.0  ;;  %v557_v21 = vadd.f32 %v556_v18, %v2515_v5  ;;  %v750_v22 = vadd.f32 %v749_v19, %v2517_v38  ;;  %v558_v23 = vpop.f32.mrb[59].mxu0  ;;  %v751_v24 = vpop.f32.mrb[59].mxu1  ;;  %1356 = vmatmul.mubr.bf16.gmra.mrb[116].mxu0 %v944_v6  ;;  %1517 = vmatmul.mubr.bf16.gmra.mrb[116].mxu1 %v946_v7  ;;  %v876_v28 = vmax.f32 %v553_v12, 0.0 }
 0x163   : > { %v879_v25 = vmax.f32 %v748_v17, 0.0  ;;  %v559_v26 = vadd.f32 %v558_v23, %v2519_v39  ;;  %v752_v27 = vadd.f32 %v751_v24, %v2521_v40  ;;  %v877_v31 = vmax.f32 %v555_v16, 0.0 }
 0x164   : > { %v880_v29 = vmax.f32 %v557_v21, 0.0  ;;  %v882_v30 = vmax.f32 %v750_v22, 0.0 }
 0x165   : > { %v881_v32 = vmax.f32 %v559_v26, 0.0  ;;  %v883_v33 = vmax.f32 %v752_v27, 0.0 }
 0x166   : > { %v948_v34 = vpack.c.bf16 %v880_v29, %v876_v28  ;;  %v950_v35 = vpack.c.bf16 %v882_v30, %v878_v20 }
 0x167   : > { %v949_v36 = vpack.c.bf16 %v881_v32, %v877_v31  ;;  %v951_v37 = vpack.c.bf16 %v883_v33, %v879_v25  ;;  %v562_v41 = vpop.f32.mrb[60].mxu0  ;;  %v755_v42 = vpop.f32.mrb[60].mxu1 }
 0x168   : > { %v563_v43 = vadd.f32 %v562_v41, %v2515_v5  ;;  %v756_v44 = vadd.f32 %v755_v42, %v2517_v38  ;;  %v564_v45 = vpop.f32.mrb[61].mxu0  ;;  %v757_v46 = vpop.f32.mrb[61].mxu1 }
 0x169   : > { %v565_v47 = vadd.f32 %v564_v45, %v2519_v39  ;;  %v758_v4 = vadd.f32 %v757_v46, %v2521_v40  ;;  %v566_v48 = vpop.f32.mrb[62].mxu0  ;;  %v759_v49 = vpop.f32.mrb[62].mxu1  ;;  %1363 = vmatprep.mubr.bf16.mxu0 %v949_v36  ;;  %1524 = vmatprep.mubr.bf16.mxu1 %v951_v37 }
 0x16a   : > { %v886_v50 = vmax.f32 %v756_v44, 0.0  ;;  %v567_v51 = vadd.f32 %v566_v48, %v2515_v5  ;;  %v760_v52 = vadd.f32 %v759_v49, %v2517_v38  ;;  %v568_v53 = vpop.f32.mrb[63].mxu0  ;;  %v761_v54 = vpop.f32.mrb[63].mxu1  ;;  %1364 = vmatmul.mubr.bf16.gmra.mrb[120].mxu0 %v948_v34  ;;  %1525 = vmatmul.mubr.bf16.gmra.mrb[120].mxu1 %v950_v35  ;;  %v884_v58 = vmax.f32 %v563_v43, 0.0 }
 0x16b   : > { %v887_v55 = vmax.f32 %v758_v4, 0.0  ;;  %v569_v56 = vadd.f32 %v568_v53, %v2519_v39  ;;  %v762_v57 = vadd.f32 %v761_v54, %v2521_v40  ;;  %v885_v61 = vmax.f32 %v565_v47, 0.0  ;;  %v2654_v39 = vld [vmem:[%s2781_s4] ss:$0 sm:$0xff] }
 0x16c   : > { %v888_v59 = vmax.f32 %v567_v51, 0.0  ;;  %v890_v60 = vmax.f32 %v760_v52, 0.0 }
 0x16d   : > { %v889_v62 = vmax.f32 %v569_v56, 0.0  ;;  %v891_v63 = vmax.f32 %v762_v57, 0.0 }
 0x16e   : > { %v952_v0 = vpack.c.bf16 %v888_v59, %v884_v58  ;;  %v954_v1 = vpack.c.bf16 %v890_v60, %v886_v50 }
 0x16f   : > { %v953_v5 = vpack.c.bf16 %v889_v62, %v885_v61  ;;  %v955_v2 = vpack.c.bf16 %v891_v63, %v887_v55 }
 0x171   : > { %1371 = vmatprep.mubr.bf16.mxu0 %v953_v5  ;;  %1532 = vmatprep.mubr.bf16.mxu1 %v955_v2 }
 0x172   : > { %1372 = vmatmul.mubr.bf16.gmra.mrb[124].mxu0 %v952_v0  ;;  %1533 = vmatmul.mubr.bf16.gmra.mrb[124].mxu1 %v954_v1 }
 0x1cd   : > { %v1809_v38 = vpop.f32.mrb[64].mxu0  ;;  %v1921_v3 = vpop.f32.mrb[64].mxu1 }
 0x1ce   : > { %v1810_v40 = vpop.f32.mrb[65].mxu0  ;;  %v1922_v6 = vpop.f32.mrb[65].mxu1 }
 0x1cf   : > { %v1811_v7 = vadd.f32 %v1810_v40, %v1809_v38  ;;  %v1923_v8 = vadd.f32 %v1922_v6, %v1921_v3  ;;  %v1812_v9 = vpop.f32.mrb[66].mxu0  ;;  %v1924_v10 = vpop.f32.mrb[66].mxu1 }
 0x1d0   : > { %v1813_v11 = vpop.f32.mrb[67].mxu0  ;;  %v1925_v12 = vpop.f32.mrb[67].mxu1 }
 0x1d1   : > { %v1254_v13 = vadd.f32 %v1811_v7, %v2654_v39  ;;  %v1814_v14 = vadd.f32 %v1813_v11, %v1812_v9  ;;  %v1926_v15 = vadd.f32 %v1925_v12, %v1924_v10 }
 0x1d3   : > { %v1415_v16 = vadd.f32 %v1923_v8, %v1254_v13  ;;  %v1257_v17 = vadd.f32 %v1814_v14, %v2654_v39 }
 0x1d5   : > { %2093 = vtanh.f32 %v1415_v16  ;;  %v1418_v18 = vadd.f32 %v1926_v15, %v1257_v17  ;;  %v1815_v19 = vpop.f32.mrb[68].mxu0  ;;  %v1927_v20 = vpop.f32.mrb[68].mxu1 }
 0x1d6   : > { %v1816_v21 = vpop.f32.mrb[69].mxu0  ;;  %v1928_v22 = vpop.f32.mrb[69].mxu1 }
 0x1d7   : > { %2095 = vtanh.f32 %v1418_v18  ;;  %v1817_v23 = vadd.f32 %v1816_v21, %v1815_v19  ;;  %v1929_v24 = vadd.f32 %v1928_v22, %v1927_v20  ;;  %v1818_v25 = vpop.f32.mrb[70].mxu0  ;;  %v1930_v26 = vpop.f32.mrb[70].mxu1 }
 0x1d8   : > { %v1819_v27 = vpop.f32.mrb[71].mxu0  ;;  %v1931_v28 = vpop.f32.mrb[71].mxu1 }
 0x1d9   : > { %v1262_v29 = vadd.f32 %v1817_v23, %v2654_v39  ;;  %v1820_v30 = vadd.f32 %v1819_v27, %v1818_v25  ;;  %v1932_v31 = vadd.f32 %v1931_v28, %v1930_v26 }
 0x1db   : > { %v1423_v32 = vadd.f32 %v1929_v24, %v1262_v29  ;;  %v1265_v33 = vadd.f32 %v1820_v30, %v2654_v39 }
 0x1dd   : > { %2097 = vtanh.f32 %v1423_v32  ;;  %v1426_v34 = vadd.f32 %v1932_v31, %v1265_v33  ;;  %v1821_v35 = vpop.f32.mrb[72].mxu0  ;;  %v1933_v36 = vpop.f32.mrb[72].mxu1 }
 0x1de   : > { %v1822_v37 = vpop.f32.mrb[73].mxu0  ;;  %v1934_v41 = vpop.f32.mrb[73].mxu1 }
 0x1df   : > { %v2094_v42 = vpop.eup %2093  ;;  %2099 = vtanh.f32 %v1426_v34  ;;  %v1823_v43 = vadd.f32 %v1822_v37, %v1821_v35  ;;  %v1935_v44 = vadd.f32 %v1934_v41, %v1933_v36  ;;  %v1824_v45 = vpop.f32.mrb[74].mxu0 }
 0x1e0   : > { %v1936_v46 = vpop.f32.mrb[74].mxu1  ;;  %v1573_v47 = vmul.f32 2.0, %v2094_v42  ;;  %v1825_v4 = vpop.f32.mrb[75].mxu0 }
 0x1e1   : > { %v1937_v48 = vpop.f32.mrb[75].mxu1  ;;  %v2096_v49 = vpop.eup %2095  ;;  %v1270_v50 = vadd.f32 %v1823_v43, %v2654_v39  ;;  %v1826_v51 = vadd.f32 %v1825_v4, %v1824_v45 }
 0x1e2   : > { %v1938_v52 = vadd.f32 %v1937_v48, %v1936_v46  ;;  %1605 = vst [vmem:[%s2664_s30] sm:$0xff] %v1573_v47  ;;  %v1574_v53 = vmul.f32 2.0, %v2096_v49 }
 0x1e3   : > { %v1431_v54 = vadd.f32 %v1935_v44, %v1270_v50  ;;  %v1273_v55 = vadd.f32 %v1826_v51, %v2654_v39 }
 0x1e4   : > { %1606 = vst [vmem:[%s2664_s30 + $0x8] sm:$0xff] %v1574_v53 }
 0x1e5   : > { %2101 = vtanh.f32 %v1431_v54  ;;  %v1434_v56 = vadd.f32 %v1938_v52, %v1273_v55  ;;  %v1827_v57 = vpop.f32.mrb[76].mxu0  ;;  %v1939_v58 = vpop.f32.mrb[76].mxu1 }
 0x1e6   : > { %v1828_v59 = vpop.f32.mrb[77].mxu0  ;;  %v1940_v60 = vpop.f32.mrb[77].mxu1 }
 0x1e7   : > { %v2098_v61 = vpop.eup %2097  ;;  %2103 = vtanh.f32 %v1434_v56  ;;  %v1829_v62 = vadd.f32 %v1828_v59, %v1827_v57  ;;  %v1941_v63 = vadd.f32 %v1940_v60, %v1939_v58  ;;  %v1830_v0 = vpop.f32.mrb[78].mxu0 }
 0x1e8   : > { %v1942_v1 = vpop.f32.mrb[78].mxu1  ;;  %v1575_v5 = vmul.f32 2.0, %v2098_v61  ;;  %v1831_v2 = vpop.f32.mrb[79].mxu0 }
 0x1e9   : > { %v1943_v38 = vpop.f32.mrb[79].mxu1  ;;  %v2100_v3 = vpop.eup %2099  ;;  %v1278_v40 = vadd.f32 %v1829_v62, %v2654_v39  ;;  %v1832_v6 = vadd.f32 %v1831_v2, %v1830_v0 }
 0x1ea   : > { %v1944_v7 = vadd.f32 %v1943_v38, %v1942_v1  ;;  %1607 = vst [vmem:[%s2664_s30 + $0x10] sm:$0xff] %v1575_v5  ;;  %v1576_v8 = vmul.f32 2.0, %v2100_v3 }
 0x1eb   : > { %v1439_v9 = vadd.f32 %v1941_v63, %v1278_v40  ;;  %v1281_v10 = vadd.f32 %v1832_v6, %v2654_v39 }
 0x1ec   : > { %1608 = vst [vmem:[%s2664_s30 + $0x18] sm:$0xff] %v1576_v8 }
 0x1ed   : > { %2105 = vtanh.f32 %v1439_v9  ;;  %v1442_v11 = vadd.f32 %v1944_v7, %v1281_v10  ;;  %v1833_v12 = vpop.f32.mrb[80].mxu0  ;;  %v1945_v13 = vpop.f32.mrb[80].mxu1 }
 0x1ee   : > { %v1834_v14 = vpop.f32.mrb[81].mxu0  ;;  %v1946_v15 = vpop.f32.mrb[81].mxu1 }
 0x1ef   : > { %v2102_v16 = vpop.eup %2101  ;;  %2107 = vtanh.f32 %v1442_v11  ;;  %v1835_v17 = vadd.f32 %v1834_v14, %v1833_v12  ;;  %v1947_v18 = vadd.f32 %v1946_v15, %v1945_v13  ;;  %v1836_v19 = vpop.f32.mrb[82].mxu0 }
 0x1f0   : > { %v1948_v20 = vpop.f32.mrb[82].mxu1  ;;  %v1577_v21 = vmul.f32 2.0, %v2102_v16  ;;  %v1837_v22 = vpop.f32.mrb[83].mxu0 }
 0x1f1   : > { %v1949_v23 = vpop.f32.mrb[83].mxu1  ;;  %v2104_v24 = vpop.eup %2103  ;;  %v1286_v25 = vadd.f32 %v1835_v17, %v2654_v39  ;;  %v1838_v26 = vadd.f32 %v1837_v22, %v1836_v19 }
 0x1f2   : > { %v1950_v27 = vadd.f32 %v1949_v23, %v1948_v20  ;;  %1609 = vst [vmem:[%s2664_s30 + $0x20] sm:$0xff] %v1577_v21  ;;  %v1578_v28 = vmul.f32 2.0, %v2104_v24 }
 0x1f3   : > { %v1447_v29 = vadd.f32 %v1947_v18, %v1286_v25  ;;  %v1289_v30 = vadd.f32 %v1838_v26, %v2654_v39 }
 0x1f4   : > { %1610 = vst [vmem:[%s2664_s30 + $0x28] sm:$0xff] %v1578_v28 }
 0x1f5   : > { %2109 = vtanh.f32 %v1447_v29  ;;  %v1450_v31 = vadd.f32 %v1950_v27, %v1289_v30  ;;  %v1839_v32 = vpop.f32.mrb[84].mxu0  ;;  %v1951_v33 = vpop.f32.mrb[84].mxu1 }
 0x1f6   : > { %v1840_v34 = vpop.f32.mrb[85].mxu0  ;;  %v1952_v35 = vpop.f32.mrb[85].mxu1 }
 0x1f7   : > { %v2106_v36 = vpop.eup %2105  ;;  %2111 = vtanh.f32 %v1450_v31  ;;  %v1841_v37 = vadd.f32 %v1840_v34, %v1839_v32  ;;  %v1953_v41 = vadd.f32 %v1952_v35, %v1951_v33  ;;  %v1842_v42 = vpop.f32.mrb[86].mxu0 }
 0x1f8   : > { %v1954_v43 = vpop.f32.mrb[86].mxu1  ;;  %v1579_v44 = vmul.f32 2.0, %v2106_v36  ;;  %v1843_v45 = vpop.f32.mrb[87].mxu0 }
 0x1f9   : > { %v1955_v46 = vpop.f32.mrb[87].mxu1  ;;  %v2108_v47 = vpop.eup %2107  ;;  %v1294_v4 = vadd.f32 %v1841_v37, %v2654_v39  ;;  %v1844_v48 = vadd.f32 %v1843_v45, %v1842_v42 }
 0x1fa   : > { %v1956_v49 = vadd.f32 %v1955_v46, %v1954_v43  ;;  %1611 = vst [vmem:[%s2664_s30 + $0x30] sm:$0xff] %v1579_v44  ;;  %v1580_v50 = vmul.f32 2.0, %v2108_v47 }
 0x1fb   : > { %v1455_v51 = vadd.f32 %v1953_v41, %v1294_v4  ;;  %v1297_v52 = vadd.f32 %v1844_v48, %v2654_v39 }
 0x1fc   : > { %1612 = vst [vmem:[%s2664_s30 + $0x38] sm:$0xff] %v1580_v50 }
 0x1fd   : > { %2113 = vtanh.f32 %v1455_v51  ;;  %v1458_v53 = vadd.f32 %v1956_v49, %v1297_v52  ;;  %v1845_v54 = vpop.f32.mrb[88].mxu0  ;;  %v1957_v55 = vpop.f32.mrb[88].mxu1 }
 0x1fe   : > { %v1846_v56 = vpop.f32.mrb[89].mxu0  ;;  %v1958_v57 = vpop.f32.mrb[89].mxu1 }
 0x1ff   : > { %v2110_v58 = vpop.eup %2109  ;;  %2115 = vtanh.f32 %v1458_v53  ;;  %v1847_v59 = vadd.f32 %v1846_v56, %v1845_v54  ;;  %v1959_v60 = vadd.f32 %v1958_v57, %v1957_v55  ;;  %v1848_v61 = vpop.f32.mrb[90].mxu0 }
 0x200   : > { %v1960_v62 = vpop.f32.mrb[90].mxu1  ;;  %v1581_v63 = vmul.f32 2.0, %v2110_v58  ;;  %v1849_v0 = vpop.f32.mrb[91].mxu0 }
 0x201   : > { %v1961_v1 = vpop.f32.mrb[91].mxu1  ;;  %v2112_v5 = vpop.eup %2111  ;;  %v1302_v2 = vadd.f32 %v1847_v59, %v2654_v39  ;;  %v1850_v38 = vadd.f32 %v1849_v0, %v1848_v61 }
 0x202   : > { %v1962_v3 = vadd.f32 %v1961_v1, %v1960_v62  ;;  %1613 = vst [vmem:[%s2664_s30 + $0x40] sm:$0xff] %v1581_v63  ;;  %v1582_v40 = vmul.f32 2.0, %v2112_v5 }
 0x203   : > { %v1463_v6 = vadd.f32 %v1959_v60, %v1302_v2  ;;  %v1305_v7 = vadd.f32 %v1850_v38, %v2654_v39 }
 0x204   : > { %1614 = vst [vmem:[%s2664_s30 + $0x48] sm:$0xff] %v1582_v40 }
 0x205   : > { %2117 = vtanh.f32 %v1463_v6  ;;  %v1466_v8 = vadd.f32 %v1962_v3, %v1305_v7  ;;  %v1851_v9 = vpop.f32.mrb[92].mxu0  ;;  %v1963_v10 = vpop.f32.mrb[92].mxu1 }
 0x206   : > { %v1852_v11 = vpop.f32.mrb[93].mxu0  ;;  %v1964_v12 = vpop.f32.mrb[93].mxu1 }
 0x207   : > { %v2114_v13 = vpop.eup %2113  ;;  %2119 = vtanh.f32 %v1466_v8  ;;  %v1853_v14 = vadd.f32 %v1852_v11, %v1851_v9  ;;  %v1965_v15 = vadd.f32 %v1964_v12, %v1963_v10  ;;  %v1854_v16 = vpop.f32.mrb[94].mxu0 }
 0x208   : > { %v1966_v17 = vpop.f32.mrb[94].mxu1  ;;  %v1583_v18 = vmul.f32 2.0, %v2114_v13  ;;  %v1855_v19 = vpop.f32.mrb[95].mxu0 }
 0x209   : > { %v1967_v20 = vpop.f32.mrb[95].mxu1  ;;  %v2116_v21 = vpop.eup %2115  ;;  %v1310_v22 = vadd.f32 %v1853_v14, %v2654_v39  ;;  %v1856_v23 = vadd.f32 %v1855_v19, %v1854_v16 }
 0x20a   : > { %v1968_v24 = vadd.f32 %v1967_v20, %v1966_v17  ;;  %1615 = vst [vmem:[%s2664_s30 + $0x50] sm:$0xff] %v1583_v18  ;;  %v1584_v25 = vmul.f32 2.0, %v2116_v21 }
 0x20b   : > { %v1471_v26 = vadd.f32 %v1965_v15, %v1310_v22  ;;  %v1313_v27 = vadd.f32 %v1856_v23, %v2654_v39 }
 0x20c   : > { %1616 = vst [vmem:[%s2664_s30 + $0x58] sm:$0xff] %v1584_v25 }
 0x20d   : > { %2121 = vtanh.f32 %v1471_v26  ;;  %v1474_v28 = vadd.f32 %v1968_v24, %v1313_v27  ;;  %v1857_v29 = vpop.f32.mrb[96].mxu0  ;;  %v1969_v30 = vpop.f32.mrb[96].mxu1 }
 0x20e   : > { %v1858_v31 = vpop.f32.mrb[97].mxu0  ;;  %v1970_v32 = vpop.f32.mrb[97].mxu1 }
 0x20f   : > { %v2118_v33 = vpop.eup %2117  ;;  %2123 = vtanh.f32 %v1474_v28  ;;  %v1859_v34 = vadd.f32 %v1858_v31, %v1857_v29  ;;  %v1971_v35 = vadd.f32 %v1970_v32, %v1969_v30  ;;  %v1860_v36 = vpop.f32.mrb[98].mxu0 }
 0x210   : > { %v1972_v37 = vpop.f32.mrb[98].mxu1  ;;  %v1585_v41 = vmul.f32 2.0, %v2118_v33  ;;  %v1861_v42 = vpop.f32.mrb[99].mxu0 }
 0x211   : > { %v1973_v43 = vpop.f32.mrb[99].mxu1  ;;  %v2120_v44 = vpop.eup %2119  ;;  %v1318_v45 = vadd.f32 %v1859_v34, %v2654_v39  ;;  %v1862_v46 = vadd.f32 %v1861_v42, %v1860_v36 }
 0x212   : > { %v1974_v47 = vadd.f32 %v1973_v43, %v1972_v37  ;;  %1617 = vst [vmem:[%s2664_s30 + $0x60] sm:$0xff] %v1585_v41  ;;  %v1586_v4 = vmul.f32 2.0, %v2120_v44 }
 0x213   : > { %v1479_v48 = vadd.f32 %v1971_v35, %v1318_v45  ;;  %v1321_v49 = vadd.f32 %v1862_v46, %v2654_v39 }
 0x214   : > { %1618 = vst [vmem:[%s2664_s30 + $0x68] sm:$0xff] %v1586_v4 }
 0x215   : > { %2125 = vtanh.f32 %v1479_v48  ;;  %v1482_v50 = vadd.f32 %v1974_v47, %v1321_v49  ;;  %v1863_v51 = vpop.f32.mrb[100].mxu0  ;;  %v1975_v52 = vpop.f32.mrb[100].mxu1 }
 0x216   : > { %v1864_v53 = vpop.f32.mrb[101].mxu0  ;;  %v1976_v54 = vpop.f32.mrb[101].mxu1 }
 0x217   : > { %v2122_v55 = vpop.eup %2121  ;;  %2127 = vtanh.f32 %v1482_v50  ;;  %v1865_v56 = vadd.f32 %v1864_v53, %v1863_v51  ;;  %v1977_v57 = vadd.f32 %v1976_v54, %v1975_v52  ;;  %v1866_v58 = vpop.f32.mrb[102].mxu0 }
 0x218   : > { %v1978_v59 = vpop.f32.mrb[102].mxu1  ;;  %v1587_v60 = vmul.f32 2.0, %v2122_v55  ;;  %v1867_v61 = vpop.f32.mrb[103].mxu0 }
 0x219   : > { %v1979_v62 = vpop.f32.mrb[103].mxu1  ;;  %v2124_v63 = vpop.eup %2123  ;;  %v1326_v0 = vadd.f32 %v1865_v56, %v2654_v39  ;;  %v1868_v1 = vadd.f32 %v1867_v61, %v1866_v58 }
 0x21a   : > { %v1980_v5 = vadd.f32 %v1979_v62, %v1978_v59  ;;  %1619 = vst [vmem:[%s2664_s30 + $0x70] sm:$0xff] %v1587_v60  ;;  %v1588_v2 = vmul.f32 2.0, %v2124_v63 }
 0x21b   : > { %v1487_v38 = vadd.f32 %v1977_v57, %v1326_v0  ;;  %v1329_v3 = vadd.f32 %v1868_v1, %v2654_v39 }
 0x21c   : > { %1620 = vst [vmem:[%s2664_s30 + $0x78] sm:$0xff] %v1588_v2 }
 0x21d   : > { %2129 = vtanh.f32 %v1487_v38  ;;  %v1490_v40 = vadd.f32 %v1980_v5, %v1329_v3  ;;  %v1869_v6 = vpop.f32.mrb[104].mxu0  ;;  %v1981_v7 = vpop.f32.mrb[104].mxu1 }
 0x21e   : > { %v1870_v8 = vpop.f32.mrb[105].mxu0  ;;  %v1982_v9 = vpop.f32.mrb[105].mxu1 }
 0x21f   : > { %v2126_v10 = vpop.eup %2125  ;;  %2131 = vtanh.f32 %v1490_v40  ;;  %v1871_v11 = vadd.f32 %v1870_v8, %v1869_v6  ;;  %v1983_v12 = vadd.f32 %v1982_v9, %v1981_v7  ;;  %v1872_v13 = vpop.f32.mrb[106].mxu0 }
 0x220   : > { %v1984_v14 = vpop.f32.mrb[106].mxu1  ;;  %v1589_v15 = vmul.f32 2.0, %v2126_v10  ;;  %v1873_v16 = vpop.f32.mrb[107].mxu0 }
 0x221   : > { %v1985_v17 = vpop.f32.mrb[107].mxu1  ;;  %v2128_v18 = vpop.eup %2127  ;;  %v1334_v19 = vadd.f32 %v1871_v11, %v2654_v39  ;;  %v1874_v20 = vadd.f32 %v1873_v16, %v1872_v13 }
 0x222   : > { %v1986_v21 = vadd.f32 %v1985_v17, %v1984_v14  ;;  %1621 = vst [vmem:[%s2664_s30 + $0x80] sm:$0xff] %v1589_v15  ;;  %v1590_v22 = vmul.f32 2.0, %v2128_v18 }
 0x223   : > { %v1495_v23 = vadd.f32 %v1983_v12, %v1334_v19  ;;  %v1337_v24 = vadd.f32 %v1874_v20, %v2654_v39 }
 0x224   : > { %1622 = vst [vmem:[%s2664_s30 + $0x88] sm:$0xff] %v1590_v22 }
 0x225   : > { %2133 = vtanh.f32 %v1495_v23  ;;  %v1498_v25 = vadd.f32 %v1986_v21, %v1337_v24  ;;  %v1875_v26 = vpop.f32.mrb[108].mxu0  ;;  %v1987_v27 = vpop.f32.mrb[108].mxu1 }
 0x226   : > { %v1876_v28 = vpop.f32.mrb[109].mxu0  ;;  %v1988_v29 = vpop.f32.mrb[109].mxu1 }
 0x227   : > { %v2130_v30 = vpop.eup %2129  ;;  %2135 = vtanh.f32 %v1498_v25  ;;  %v1877_v31 = vadd.f32 %v1876_v28, %v1875_v26  ;;  %v1989_v32 = vadd.f32 %v1988_v29, %v1987_v27  ;;  %v1878_v33 = vpop.f32.mrb[110].mxu0 }
 0x228   : > { %v1990_v34 = vpop.f32.mrb[110].mxu1  ;;  %v1591_v35 = vmul.f32 2.0, %v2130_v30  ;;  %v1879_v36 = vpop.f32.mrb[111].mxu0 }
 0x229   : > { %v1991_v37 = vpop.f32.mrb[111].mxu1  ;;  %v2132_v41 = vpop.eup %2131  ;;  %v1342_v42 = vadd.f32 %v1877_v31, %v2654_v39  ;;  %v1880_v43 = vadd.f32 %v1879_v36, %v1878_v33 }
 0x22a   : > { %v1992_v44 = vadd.f32 %v1991_v37, %v1990_v34  ;;  %1623 = vst [vmem:[%s2664_s30 + $0x90] sm:$0xff] %v1591_v35  ;;  %v1592_v45 = vmul.f32 2.0, %v2132_v41 }
 0x22b   : > { %v1503_v46 = vadd.f32 %v1989_v32, %v1342_v42  ;;  %v1345_v47 = vadd.f32 %v1880_v43, %v2654_v39 }
 0x22c   : > { %1624 = vst [vmem:[%s2664_s30 + $0x98] sm:$0xff] %v1592_v45 }
 0x22d   : > { %2137 = vtanh.f32 %v1503_v46  ;;  %v1506_v4 = vadd.f32 %v1992_v44, %v1345_v47  ;;  %v1881_v48 = vpop.f32.mrb[112].mxu0  ;;  %v1993_v49 = vpop.f32.mrb[112].mxu1 }
 0x22e   : > { %v1882_v50 = vpop.f32.mrb[113].mxu0  ;;  %v1994_v51 = vpop.f32.mrb[113].mxu1 }
 0x22f   : > { %v2134_v52 = vpop.eup %2133  ;;  %2139 = vtanh.f32 %v1506_v4  ;;  %v1883_v53 = vadd.f32 %v1882_v50, %v1881_v48  ;;  %v1995_v54 = vadd.f32 %v1994_v51, %v1993_v49  ;;  %v1884_v55 = vpop.f32.mrb[114].mxu0 }
 0x230   : > { %v1996_v56 = vpop.f32.mrb[114].mxu1  ;;  %v1593_v57 = vmul.f32 2.0, %v2134_v52  ;;  %v1885_v58 = vpop.f32.mrb[115].mxu0 }
 0x231   : > { %v1997_v59 = vpop.f32.mrb[115].mxu1  ;;  %v2136_v60 = vpop.eup %2135  ;;  %v1350_v61 = vadd.f32 %v1883_v53, %v2654_v39  ;;  %v1886_v62 = vadd.f32 %v1885_v58, %v1884_v55 }
 0x232   : > { %v1998_v63 = vadd.f32 %v1997_v59, %v1996_v56  ;;  %1625 = vst [vmem:[%s2664_s30 + $0xa0] sm:$0xff] %v1593_v57  ;;  %v1594_v0 = vmul.f32 2.0, %v2136_v60 }
 0x233   : > { %v1511_v1 = vadd.f32 %v1995_v54, %v1350_v61  ;;  %v1353_v5 = vadd.f32 %v1886_v62, %v2654_v39 }
 0x234   : > { %1626 = vst [vmem:[%s2664_s30 + $0xa8] sm:$0xff] %v1594_v0 }
 0x235   : > { %2141 = vtanh.f32 %v1511_v1  ;;  %v1514_v2 = vadd.f32 %v1998_v63, %v1353_v5  ;;  %v1887_v38 = vpop.f32.mrb[116].mxu0  ;;  %v1999_v3 = vpop.f32.mrb[116].mxu1 }
 0x236   : > { %v1888_v40 = vpop.f32.mrb[117].mxu0  ;;  %v2000_v6 = vpop.f32.mrb[117].mxu1 }
 0x237   : > { %v2138_v7 = vpop.eup %2137  ;;  %2143 = vtanh.f32 %v1514_v2  ;;  %v1889_v8 = vadd.f32 %v1888_v40, %v1887_v38  ;;  %v2001_v9 = vadd.f32 %v2000_v6, %v1999_v3  ;;  %v1890_v10 = vpop.f32.mrb[118].mxu0 }
 0x238   : > { %v2002_v11 = vpop.f32.mrb[118].mxu1  ;;  %v1595_v12 = vmul.f32 2.0, %v2138_v7  ;;  %v1891_v13 = vpop.f32.mrb[119].mxu0 }
 0x239   : > { %v2003_v14 = vpop.f32.mrb[119].mxu1  ;;  %v2140_v15 = vpop.eup %2139  ;;  %v1358_v16 = vadd.f32 %v1889_v8, %v2654_v39  ;;  %v1892_v17 = vadd.f32 %v1891_v13, %v1890_v10 }
 0x23a   : > { %v2004_v18 = vadd.f32 %v2003_v14, %v2002_v11  ;;  %1627 = vst [vmem:[%s2664_s30 + $0xb0] sm:$0xff] %v1595_v12  ;;  %v1596_v19 = vmul.f32 2.0, %v2140_v15 }
 0x23b   : > { %v1519_v20 = vadd.f32 %v2001_v9, %v1358_v16  ;;  %v1361_v21 = vadd.f32 %v1892_v17, %v2654_v39 }
 0x23c   : > { %1628 = vst [vmem:[%s2664_s30 + $0xb8] sm:$0xff] %v1596_v19 }
 0x23d   : > { %2145 = vtanh.f32 %v1519_v20  ;;  %v1522_v22 = vadd.f32 %v2004_v18, %v1361_v21  ;;  %v1893_v23 = vpop.f32.mrb[120].mxu0  ;;  %v2005_v24 = vpop.f32.mrb[120].mxu1 }
 0x23e   : > { %v1894_v25 = vpop.f32.mrb[121].mxu0  ;;  %v2006_v26 = vpop.f32.mrb[121].mxu1 }
 0x23f   : > { %v2142_v27 = vpop.eup %2141  ;;  %2147 = vtanh.f32 %v1522_v22  ;;  %v1895_v28 = vadd.f32 %v1894_v25, %v1893_v23  ;;  %v2007_v29 = vadd.f32 %v2006_v26, %v2005_v24  ;;  %v1896_v30 = vpop.f32.mrb[122].mxu0 }
 0x240   : > { %v2008_v31 = vpop.f32.mrb[122].mxu1  ;;  %v1597_v32 = vmul.f32 2.0, %v2142_v27  ;;  %v1897_v33 = vpop.f32.mrb[123].mxu0 }
 0x241   : > { %v2009_v34 = vpop.f32.mrb[123].mxu1  ;;  %v2144_v35 = vpop.eup %2143  ;;  %v1366_v36 = vadd.f32 %v1895_v28, %v2654_v39  ;;  %v1898_v37 = vadd.f32 %v1897_v33, %v1896_v30 }
 0x242   : > { %v2010_v41 = vadd.f32 %v2009_v34, %v2008_v31  ;;  %1629 = vst [vmem:[%s2664_s30 + $0xc0] sm:$0xff] %v1597_v32  ;;  %v1598_v42 = vmul.f32 2.0, %v2144_v35 }
 0x243   : > { %v1527_v43 = vadd.f32 %v2007_v29, %v1366_v36  ;;  %v1369_v44 = vadd.f32 %v1898_v37, %v2654_v39 }
 0x244   : > { %1630 = vst [vmem:[%s2664_s30 + $0xc8] sm:$0xff] %v1598_v42 }
 0x245   : > { %2149 = vtanh.f32 %v1527_v43  ;;  %v1530_v45 = vadd.f32 %v2010_v41, %v1369_v44  ;;  %v1899_v46 = vpop.f32.mrb[124].mxu0  ;;  %v2011_v47 = vpop.f32.mrb[124].mxu1 }
 0x246   : > { %v1900_v4 = vpop.f32.mrb[125].mxu0  ;;  %v2012_v48 = vpop.f32.mrb[125].mxu1 }
 0x247   : > { %v2146_v49 = vpop.eup %2145  ;;  %2151 = vtanh.f32 %v1530_v45  ;;  %v1901_v50 = vadd.f32 %v1900_v4, %v1899_v46  ;;  %v2013_v51 = vadd.f32 %v2012_v48, %v2011_v47  ;;  %v1902_v52 = vpop.f32.mrb[126].mxu0 }
 0x248   : > { %v2014_v53 = vpop.f32.mrb[126].mxu1  ;;  %v1599_v54 = vmul.f32 2.0, %v2146_v49  ;;  %v1903_v55 = vpop.f32.mrb[127].mxu0 }
 0x249   : > { %v2015_v56 = vpop.f32.mrb[127].mxu1  ;;  %v2148_v57 = vpop.eup %2147  ;;  %v1374_v58 = vadd.f32 %v1901_v50, %v2654_v39  ;;  %v1904_v59 = vadd.f32 %v1903_v55, %v1902_v52 }
 0x24a   : > { %v2016_v60 = vadd.f32 %v2015_v56, %v2014_v53  ;;  %1631 = vst [vmem:[%s2664_s30 + $0xd0] sm:$0xff] %v1599_v54  ;;  %v1600_v61 = vmul.f32 2.0, %v2148_v57 }
 0x24b   : > { %v1535_v62 = vadd.f32 %v2013_v51, %v1374_v58  ;;  %v1377_v63 = vadd.f32 %v1904_v59, %v2654_v39 }
 0x24c   : > { %1632 = vst [vmem:[%s2664_s30 + $0xd8] sm:$0xff] %v1600_v61 }
 0x24d   : > { %2153 = vtanh.f32 %v1535_v62  ;;  %v1538_v0 = vadd.f32 %v2016_v60, %v1377_v63 }
 0x24f   : > { %v2150_v1 = vpop.eup %2149  ;;  %2155 = vtanh.f32 %v1538_v0 }
 0x250   : > { %v1601_v5 = vmul.f32 2.0, %v2150_v1 }
 0x251   : > { %v2152_v2 = vpop.eup %2151 }
 0x252   : > { %1633 = vst [vmem:[%s2664_s30 + $0xe0] sm:$0xff] %v1601_v5  ;;  %v1602_v38 = vmul.f32 2.0, %v2152_v2 }
 0x254   : > { %1634 = vst [vmem:[%s2664_s30 + $0xe8] sm:$0xff] %v1602_v38 }
 0x257   : > { %v2154_v3 = vpop.eup %2153 }
 0x258   : > { %v1603_v40 = vmul.f32 2.0, %v2154_v3 }
 0x259   : > { %v2156_v6 = vpop.eup %2155 }
 0x25a   : > { %1635 = vst [vmem:[%s2664_s30 + $0xf0] sm:$0xff] %v1603_v40  ;;  %v1604_v39 = vmul.f32 2.0, %v2156_v6 }
 0x25c   : > { %1636 = vst [vmem:[%s2664_s30 + $0xf8] sm:$0xff] %v1604_v39 }
 0x25d   : > { %2170 = shalt.err (!%p2167_p3)
}
 0x25e   : > { %s2171_s16 = scalar_lea.hbm %s2728_s10, 4096  ;;  %s2175_s23 = scalar_lea.hbm %s2782_s5, 16384 }
 0x25f   : > { %p2172_p4 = scmp.ne.s32.totalorder %s2728_s10, %s2171_s16  ;;  %p2176_p9 = scmp.lt.u32.totalorder %s2728_s10, %s2782_s5 }
 0x260   : > { %p2177_p10 = scmp.lt.u32.totalorder %s2175_s23, %s2171_s16  ;;  %p2179_p12 = scmp.lt.u32.totalorder %s2171_s16, %s2728_s10 }
 0x261   : > { %p2173_p7 = pnand %p2172_p4, %p2294_p5 }
 0x262   : > { %p2178_p11 = por %p2177_p10, %p2176_p9 }
 0x263   : > { %p2174_p8 = pneg %p2173_p7 }
 0x264   : > { %p2180_p13 = por %p2179_p12, %p2178_p11 }
 0x266   : > { %p2181_p0 = pnand %p2180_p13, %p2174_p8 }
 0x268   : > { %2184 = shalt.err (!%p2181_p0)
}
 0x269   : > { %s2224_s30 = smov 128   ;;  %s2225_s6 = smov 8  }
 0x26a   : > { %2017 = dma.vmem_to_hbm [thread:$0]  (%p2294_p5), %s2730_s7, 4096, %s2728_s10, %s2736_s12, %s2224_s30, %s2224_s30, %s2225_s6  }
 0x26b PF: > { %p2023_p1 = scmp.ge.s32.totalorder %s2219_s21, 2  ;;  %s1666_s8 = sand.u32 1, %s2207_s18  }
 0x26c   : > { %s1667_s9 = scalar_lea.sflag [#allocation3], %s1666_s8 }
 0x26d   : > { %p2020_p2 = pnand %p2023_p1, %p2298_p6 }
 0x26f   : > { %2202 = dma.done.wait (!%p2020_p2), %s1667_s9, 4096  }
 0x270   : > { %2204 = vsyncadd (!%p2020_p2), %s1667_s9, 4294963200  ;;  %p15_p3 = scmp.ge.s32.totalorder %s2281_s24, 6   ;;  %s2785_s18 = smov %s2211_s19 }
 0x271   : > { %s2786_s19 = smov %s2215_s20  ;;  %s2787_s20 = smov %s2292_s27 }
 0x272   : > { %s2788_s21 = smov %s2281_s24  ;;  %17 = sbr.rel (!%p15_p3) target bundleno = 3 (0x3), region = 75 }
 0x279   :  { %1672 = vsyncpa [#allocation3], 1 }
 0x27a   :  { %1674 = vsyncpa [#allocation3 + $0x1], 1 }

</bundles_post_ra>
